<compile_context>
chip_gen: v7x
topology: tpu7x:2x2x1
jax: 0.10.0
libtpu: 0.0.40
codegen_flags: <defaults>
</compile_context>

<pallas_src>
import functools

import jax
import jax.numpy as jnp
from jax import lax
from jax.experimental import pallas as pl
from jax.experimental.pallas import tpu as pltpu

# MXU operand dtype. bf16 = full-rate MXU everywhere (f32 accumulation kept via
# preferred_element_type); jnp.float32 = closest to the PyTorch reference.
MATMUL_DTYPE = jnp.bfloat16

# Geometry implied by the module (view(-1, 16*5*5) forces a 3x32x32 input).
_H0, _W0, _C0 = 32, 32, 3
_K = 5
_C1, _C2 = 6, 16
_H1, _W1 = 28, 28            # conv1 output
_HP1, _WP1 = 14, 14          # pool1 output
_H2, _W2 = 10, 10            # conv2 output
_HP2, _WP2 = 5, 5            # pool2 output
_F1, _F2, _F3 = 120, 84, 10
_FO_PAD = 128                # lane-dense padded logits width


# ---------------------------------------------------------------------------
# Fused Pallas kernel: TB images per grid step, everything VMEM resident.
# ---------------------------------------------------------------------------

def _cifar_block_kernel(x_ref,
                        w1_ref, b1_ref, r1a_ref, r1b_ref, c1a_ref, c1b_ref,
                        w2_ref, b2_ref, r2a_ref, r2b_ref, c2a_ref, c2b_ref,
                        wf1_ref, bf1_ref, wf2_ref, bf2_ref, wf3_ref, bf3_ref,
                        o_ref, p2buf_ref):
    f32 = jnp.float32
    cd = MATMUL_DTYPE
    tb = x_ref.shape[0]

    def dot(a, b):  # MXU matmul with f32 accumulation
        return jnp.dot(a.astype(cd), b.astype(cd), preferred_element_type=f32)

    def per_image(i, carry):
        x = x_ref[i].astype(f32)                                   # [32, 96] = [H, W*C]

        # conv1 + ReLU: 5 per-kh block-Toeplitz matmuls (no im2col, no lane concat).
        a1 = dot(x[0:_H1, :], w1_ref[0])
        for kh in range(1, _K):
            a1 = a1 + dot(x[kh:kh + _H1, :], w1_ref[kh])
        a1 = jnp.maximum(a1 + b1_ref[...], 0.0)                    # [28, 168]

        # pool1 (2x2, stride 2): row/col 0-1 select matmuls + f32 elementwise max.
        rm1 = jnp.maximum(dot(r1a_ref[...], a1), dot(r1b_ref[...], a1))    # [14, 168]
        p1 = jnp.maximum(dot(rm1, c1a_ref[...]), dot(rm1, c1b_ref[...]))   # [14, 84]

        # conv2 + ReLU.
        a2 = dot(p1[0:_H2, :], w2_ref[0])
        for kh in range(1, _K):
            a2 = a2 + dot(p1[kh:kh + _H2, :], w2_ref[kh])
        a2 = jnp.maximum(a2 + b2_ref[...], 0.0)                    # [10, 160]

        # pool2.
        rm2 = jnp.maximum(dot(r2a_ref[...], a2), dot(r2b_ref[...], a2))    # [5, 160]
        p2 = jnp.maximum(dot(rm2, c2a_ref[...]), dot(rm2, c2b_ref[...]))   # [5, 80]

        # Stash this image's (h, w*c) rows into the block scratch at sublane
        # offset i -- no 400-lane flatten; fc1 reads the scratch per h plane.
        for h in range(_HP2):
            p2buf_ref[h, pl.ds(i, 1), :] = p2[h:h + 1, :]
        return carry

    lax.fori_loop(0, tb, per_image, 0)

    # Batched FC stage (M = TB).  fc1 contracted per pooled row h (K=80 each).
    h1 = dot(p2buf_ref[0], wf1_ref[0])
    for h in range(1, _HP2):
        h1 = h1 + dot(p2buf_ref[h], wf1_ref[h])
    h1 = jnp.maximum(h1 + bf1_ref[...], 0.0)                       # [TB, 120]
    h2 = jnp.maximum(dot(h1, wf2_ref[...]) + bf2_ref[...], 0.0)    # [TB, 84]
    # fc3 weight/bias pre-padded to 128 output lanes -> single lane-dense store.
    o_ref[...] = (dot(h2, wf3_ref[...]) + bf3_ref[...]).astype(o_ref.dtype)  # [TB, 128]


# ---------------------------------------------------------------------------
# One-time weight preprocessing (outside the jitted forward).
# ---------------------------------------------------------------------------

def _toeplitz_conv_weight(w_oihw, w_in, w_out, dtype):
    """[Cout,Cin,KH,KW] -> stacked per-kh block-Toeplitz matrices
    [KH, w_in*Cin, w_out*Cout] matching the planar (H, W*C) activation layout:
        out[oh, ow*Cout+co] = sum_kh dot(x[oh+kh, :], T[kh])[ow*Cout+co]."""
    c_out, c_in, k_h, k_w = w_oihw.shape
    w_t = jnp.transpose(w_oihw.astype(jnp.float32), (2, 3, 1, 0))   # [kh, kw, ci, co]
    iw = jnp.arange(w_in)
    ow = jnp.arange(w_out)
    kw_idx = iw[:, None] - ow[None, :]                              # [w_in, w_out]
    valid = (kw_idx >= 0) & (kw_idx < k_w)
    kw_safe = jnp.clip(kw_idx, 0, k_w - 1)
    taps = w_t[:, kw_safe, :, :]                                    # [kh, w_in, w_out, ci, co]
    taps = taps * valid[None, :, :, None, None].astype(jnp.float32)
    taps = jnp.transpose(taps, (0, 1, 3, 2, 4))                     # [kh, w_in, ci, w_out, co]
    return taps.reshape(k_h, w_in * c_in, w_out * c_out).astype(dtype)


def _row_select(h_out, dh, dtype):
    """[Hout, 2*Hout] 0/1 matrix: (R @ x)[r, :] == x[2*r + dh, :]."""
    rows = 2 * jnp.arange(h_out) + dh
    return (jnp.arange(2 * h_out)[None, :] == rows[:, None]).astype(dtype)


def _col_select(w_out, c, dw, dtype):
    """[2*Wout*C, Wout*C] 0/1 matrix gathering lane (2*wo+dw)*C + ch -> wo*C + ch."""
    src = jnp.arange(2 * w_out * c)
    dst = jnp.arange(w_out * c)
    want = (2 * (dst // c) + dw) * c + (dst % c)
    return (src[:, None] == want[None, :]).astype(dtype)


def prepare_params(params):
    """Convert PyTorch-layout params into kernel-ready matrices (done once)."""
    cd = MATMUL_DTYPE
    f32 = jnp.float32

    w1 = _toeplitz_conv_weight(params["conv1_w"], _W0, _W1, cd)     # [5, 96, 168]
    b1 = jnp.tile(params["conv1_b"].astype(f32), _W1).reshape(1, _W1 * _C1)
    w2 = _toeplitz_conv_weight(params["conv2_w"], _WP1, _W2, cd)    # [5, 84, 160]
    b2 = jnp.tile(params["conv2_b"].astype(f32), _W2).reshape(1, _W2 * _C2)

    r1a, r1b = _row_select(_HP1, 0, cd), _row_select(_HP1, 1, cd)          # [14, 28]
    c1a, c1b = _col_select(_WP1, _C1, 0, cd), _col_select(_WP1, _C1, 1, cd)  # [168, 84]
    r2a, r2b = _row_select(_HP2, 0, cd), _row_select(_HP2, 1, cd)          # [5, 10]
    c2a, c2b = _col_select(_WP2, _C2, 0, cd), _col_select(_WP2, _C2, 1, cd)  # [160, 80]

    # fc1: PyTorch rows flatten as (c, h, w); re-layout to per-h [w*c, 120] blocks.
    wf1 = params["fc1_w"].astype(f32).reshape(_F1, _C2, _HP2, _WP2)  # [120, c, h, w]
    wf1 = jnp.transpose(wf1, (2, 3, 1, 0))                           # [h, w, c, 120]
    wf1 = wf1.reshape(_HP2, _WP2 * _C2, _F1).astype(cd)              # [5, 80, 120]
    bf1 = params["fc1_b"].astype(f32).reshape(1, _F1)
    wf2 = params["fc2_w"].astype(f32).T.astype(cd)                   # [120, 84]
    bf2 = params["fc2_b"].astype(f32).reshape(1, _F2)
    # fc3 transposed to [84, 10] then zero-padded to 128 lanes (lane-dense store).
    wf3 = jnp.pad(params["fc3_w"].astype(f32).T,
                  ((0, 0), (0, _FO_PAD - _F3))).astype(cd)           # [84, 128]
    bf3 = jnp.pad(params["fc3_b"].astype(f32),
                  (0, _FO_PAD - _F3)).reshape(1, _FO_PAD)            # [1, 128]

    return (w1, b1, r1a, r1b, c1a, c1b,
            w2, b2, r2a, r2b, c2a, c2b,
            wf1, bf1, wf2, bf2, wf3, bf3)


# ---------------------------------------------------------------------------
# Forward pass (single pallas_call, grid over batch blocks of TB images).
# ---------------------------------------------------------------------------

def _const_index_map(i, *, ndim):
    return (0,) * ndim


@functools.partial(jax.jit, static_argnames=("block_batch",))
def cifar_cnn_forward(x_nchw, prep, *, block_batch=8):
    B = x_nchw.shape[0]
    TB = int(block_batch)
    if TB % 8 != 0:
        raise ValueError("block_batch must be a multiple of 8 (sublane tiling).")
    Bp = ((B + TB - 1) // TB) * TB

    # NCHW -> per-image planar [H, W*C]; the only out-of-kernel data movement.
    x = jnp.transpose(x_nchw.astype(jnp.float32), (0, 2, 3, 1)).reshape(B, _H0, _W0 * _C0)
    if Bp != B:
        x = jnp.pad(x, ((0, Bp - B), (0, 0), (0, 0)))

    in_specs = [pl.BlockSpec((TB, _H0, _W0 * _C0), lambda i: (i, 0, 0))]
    # Weights: whole-array VMEM blocks (constant index map), resident across the grid.
    in_specs += [pl.BlockSpec(p.shape, functools.partial(_const_index_map, ndim=p.ndim))
                 for p in prep]

    out = pl.pallas_call(
        _cifar_block_kernel,
        out_shape=jax.ShapeDtypeStruct((Bp, _FO_PAD), jnp.float32),
        grid=(Bp // TB,),
        in_specs=in_specs,
        out_specs=pl.BlockSpec((TB, _FO_PAD), lambda i: (i, 0)),
        scratch_shapes=[pltpu.VMEM((_HP2, TB, _WP2 * _C2), jnp.float32)],
        compiler_params=pltpu.CompilerParams(
            # Batch blocks are independent -> shard across cores (v7x: 2 TensorCores).
            dimension_semantics=("parallel",)),
    )(x, *prep)
    return out[:B, :_F3]


# ---------------------------------------------------------------------------
# Pure-JAX reference (matches the PyTorch module), params, driver.
# ---------------------------------------------------------------------------

def _maxpool2x2(y):
    b, c, h, w = y.shape
    return y.reshape(b, c, h // 2, 2, w // 2, 2).max(axis=(3, 5))


def reference_forward(x_nchw, params):
    f32 = jnp.float32
    dn = ("NCHW", "OIHW", "NCHW")
    y = lax.conv_general_dilated(x_nchw.astype(f32), params["conv1_w"],
                                 (1, 1), "VALID", dimension_numbers=dn)
    y = jax.nn.relu(y + params["conv1_b"][None, :, None, None])
    y = _maxpool2x2(y)
    y = lax.conv_general_dilated(y, params["conv2_w"],
                                 (1, 1), "VALID", dimension_numbers=dn)
    y = jax.nn.relu(y + params["conv2_b"][None, :, None, None])
    y = _maxpool2x2(y)
    y = y.reshape(y.shape[0], -1)                       # torch .view(-1, 400): (c,h,w) order
    y = jax.nn.relu(y @ params["fc1_w"].T + params["fc1_b"])
    y = jax.nn.relu(y @ params["fc2_w"].T + params["fc2_b"])
    return y @ params["fc3_w"].T + params["fc3_b"]


def init_params(key):
    """Deterministic synthetic init, PyTorch-style U(-1/sqrt(fan_in), 1/sqrt(fan_in))."""
    def u(k, shape, fan_in):
        bound = 1.0 / jnp.sqrt(jnp.float32(fan_in))
        return jax.random.uniform(k, shape, jnp.float32, -bound, bound)

    ks = jax.random.split(key, 10)
    return {
        "conv1_w": u(ks[0], (6, 3, 5, 5), 3 * 5 * 5),
        "conv1_b": u(ks[1], (6,), 3 * 5 * 5),
        "conv2_w": u(ks[2], (16, 6, 5, 5), 6 * 5 * 5),
        "conv2_b": u(ks[3], (16,), 6 * 5 * 5),
        "fc1_w": u(ks[4], (120, 400), 400),   # PyTorch Linear weight: [out, in]
        "fc1_b": u(ks[5], (120,), 400),
        "fc2_w": u(ks[6], (84, 120), 120),
        "fc2_b": u(ks[7], (84,), 120),
        "fc3_w": u(ks[8], (10, 84), 84),
        "fc3_b": u(ks[9], (10,), 84),
    }


if __name__ == "__main__":
    key = jax.random.PRNGKey(0)
    k_x, k_p = jax.random.split(key)
    # CIFAR-sized input is forced by the module's view(-1, 16*5*5): 3x32x32.
    B = 16
    x = jax.random.normal(k_x, (B, 3, 32, 32), jnp.float32)
    params = init_params(k_p)
    prep = prepare_params(params)   # one-time weight preprocessing, outside the jit'd forward

    out = cifar_cnn_forward(x, prep, block_batch=8)    # grid=(2,): even, both v7x TCs busy
    out = jax.block_until_ready(out)
    assert out.shape == (B, 10) and out.dtype == jnp.float32

    # Loose tolerance: MXU operands are bf16 (accumulation f32); logits are O(0.1).
    ref = jax.block_until_ready(reference_forward(x, params))
    err = float(jnp.max(jnp.abs(out - ref)))
    assert err < 5e-2, f"max abs error vs reference: {err}"
    print("KERNEL_OK")
</pallas_src>

<mosaic_0001>
module attributes {stable_mosaic.version = 11 : i64} {
  func.func @_cifar_block_kernel(%arg0: i32, %arg1: memref<8x32x96xf32, #tpu.memory_space<vmem>>, %arg2: memref<5x96x168xbf16, #tpu.memory_space<vmem>>, %arg3: memref<1x168xf32, #tpu.memory_space<vmem>>, %arg4: memref<14x28xbf16, #tpu.memory_space<vmem>>, %arg5: memref<14x28xbf16, #tpu.memory_space<vmem>>, %arg6: memref<168x84xbf16, #tpu.memory_space<vmem>>, %arg7: memref<168x84xbf16, #tpu.memory_space<vmem>>, %arg8: memref<5x84x160xbf16, #tpu.memory_space<vmem>>, %arg9: memref<1x160xf32, #tpu.memory_space<vmem>>, %arg10: memref<5x10xbf16, #tpu.memory_space<vmem>>, %arg11: memref<5x10xbf16, #tpu.memory_space<vmem>>, %arg12: memref<160x80xbf16, #tpu.memory_space<vmem>>, %arg13: memref<160x80xbf16, #tpu.memory_space<vmem>>, %arg14: memref<5x80x120xbf16, #tpu.memory_space<vmem>>, %arg15: memref<1x120xf32, #tpu.memory_space<vmem>>, %arg16: memref<120x84xbf16, #tpu.memory_space<vmem>>, %arg17: memref<1x84xf32, #tpu.memory_space<vmem>>, %arg18: memref<84x128xbf16, #tpu.memory_space<vmem>>, %arg19: memref<1x128xf32, #tpu.memory_space<vmem>>, %arg20: memref<8x128xf32, #tpu.memory_space<vmem>>, %arg21: memref<5x8x80xf32, #tpu.memory_space<vmem>>) attributes {dimension_semantics = [#tpu.dimension_semantics<parallel>], iteration_bounds = array<i64: 2>, scalar_prefetch = 0 : i64, scratch_operands = 1 : i64, tpu.core_type = #tpu.core_type<tc>, window_params = [{transform_indices = @transform_0, window_bounds = array<i64: 8, 32, 96>}, {pipeline_mode = #tpu.pipeline_mode<synchronous>, transform_indices = @transform_1, window_bounds = array<i64: 5, 96, 168>}, {pipeline_mode = #tpu.pipeline_mode<synchronous>, transform_indices = @transform_2, window_bounds = array<i64: 1, 168>}, {pipeline_mode = #tpu.pipeline_mode<synchronous>, transform_indices = @transform_3, window_bounds = array<i64: 14, 28>}, {pipeline_mode = #tpu.pipeline_mode<synchronous>, transform_indices = @transform_4, window_bounds = array<i64: 14, 28>}, {pipeline_mode = #tpu.pipeline_mode<synchronous>, transform_indices = @transform_5, window_bounds = array<i64: 168, 84>}, {pipeline_mode = #tpu.pipeline_mode<synchronous>, transform_indices = @transform_6, window_bounds = array<i64: 168, 84>}, {pipeline_mode = #tpu.pipeline_mode<synchronous>, transform_indices = @transform_7, window_bounds = array<i64: 5, 84, 160>}, {pipeline_mode = #tpu.pipeline_mode<synchronous>, transform_indices = @transform_8, window_bounds = array<i64: 1, 160>}, {pipeline_mode = #tpu.pipeline_mode<synchronous>, transform_indices = @transform_9, window_bounds = array<i64: 5, 10>}, {pipeline_mode = #tpu.pipeline_mode<synchronous>, transform_indices = @transform_10, window_bounds = array<i64: 5, 10>}, {pipeline_mode = #tpu.pipeline_mode<synchronous>, transform_indices = @transform_11, window_bounds = array<i64: 160, 80>}, {pipeline_mode = #tpu.pipeline_mode<synchronous>, transform_indices = @transform_12, window_bounds = array<i64: 160, 80>}, {pipeline_mode = #tpu.pipeline_mode<synchronous>, transform_indices = @transform_13, window_bounds = array<i64: 5, 80, 120>}, {pipeline_mode = #tpu.pipeline_mode<synchronous>, transform_indices = @transform_14, window_bounds = array<i64: 1, 120>}, {pipeline_mode = #tpu.pipeline_mode<synchronous>, transform_indices = @transform_15, window_bounds = array<i64: 120, 84>}, {pipeline_mode = #tpu.pipeline_mode<synchronous>, transform_indices = @transform_16, window_bounds = array<i64: 1, 84>}, {pipeline_mode = #tpu.pipeline_mode<synchronous>, transform_indices = @transform_17, window_bounds = array<i64: 84, 128>}, {pipeline_mode = #tpu.pipeline_mode<synchronous>, transform_indices = @transform_18, window_bounds = array<i64: 1, 128>}, {transform_indices = @transform_19, window_bounds = array<i64: 8, 128>}]} {
    %c0_i32 = arith.constant 0 : i32
    %c8_i32 = arith.constant 8 : i32
    %0 = arith.addi %c0_i32, %c8_i32 : i32
    %c1_i32 = arith.constant 1 : i32
    scf.for %arg22 = %c0_i32 to %0 step %c1_i32  : i32 {
      %55 = arith.index_cast %arg22 : i32 to index
      %c0_46 = arith.constant 0 : index
      %c0_47 = arith.constant 0 : index
      %56 = vector.load %arg1[%55, %c0_46, %c0_47] : memref<8x32x96xf32, #tpu.memory_space<vmem>>, vector<1x32x96xf32>
      %57 = vector.shape_cast %56 : vector<1x32x96xf32> to vector<32x96xf32>
      %58 = vector.extract_strided_slice %57 {offsets = [0, 0], sizes = [28, 96], strides = [1, 1]} : vector<32x96xf32> to vector<28x96xf32>
      %c0_48 = arith.constant 0 : index
      %c0_49 = arith.constant 0 : index
      %c0_50 = arith.constant 0 : index
      %59 = vector.load %arg2[%c0_48, %c0_49, %c0_50] : memref<5x96x168xbf16, #tpu.memory_space<vmem>>, vector<1x96x168xbf16>
      %60 = vector.shape_cast %59 : vector<1x96x168xbf16> to vector<96x168xbf16>
      %61 = arith.truncf %58 : vector<28x96xf32> to vector<28x96xbf16>
      %cst_51 = arith.constant dense<0.000000e+00> : vector<28x168xf32>
      %62 = tpu.matmul %61, %60, %cst_51 {dimension_numbers = #tpu.dot_dimension_numbers<[1], [0], [0], [1], [0, 0, 1, 1], [], []>} : vector<28x96xbf16>, vector<96x168xbf16>, vector<28x168xf32> -> vector<28x168xf32>
      %63 = vector.extract_strided_slice %57 {offsets = [1, 0], sizes = [28, 96], strides = [1, 1]} : vector<32x96xf32> to vector<28x96xf32>
      %c1_52 = arith.constant 1 : index
      %c0_53 = arith.constant 0 : index
      %c0_54 = arith.constant 0 : index
      %64 = vector.load %arg2[%c1_52, %c0_53, %c0_54] : memref<5x96x168xbf16, #tpu.memory_space<vmem>>, vector<1x96x168xbf16>
      %65 = vector.shape_cast %64 : vector<1x96x168xbf16> to vector<96x168xbf16>
      %66 = arith.truncf %63 : vector<28x96xf32> to vector<28x96xbf16>
      %cst_55 = arith.constant dense<0.000000e+00> : vector<28x168xf32>
      %67 = tpu.matmul %66, %65, %cst_55 {dimension_numbers = #tpu.dot_dimension_numbers<[1], [0], [0], [1], [0, 0, 1, 1], [], []>} : vector<28x96xbf16>, vector<96x168xbf16>, vector<28x168xf32> -> vector<28x168xf32>
      %68 = arith.addf %62, %67 : vector<28x168xf32>
      %69 = vector.extract_strided_slice %57 {offsets = [2, 0], sizes = [28, 96], strides = [1, 1]} : vector<32x96xf32> to vector<28x96xf32>
      %c2_56 = arith.constant 2 : index
      %c0_57 = arith.constant 0 : index
      %c0_58 = arith.constant 0 : index
      %70 = vector.load %arg2[%c2_56, %c0_57, %c0_58] : memref<5x96x168xbf16, #tpu.memory_space<vmem>>, vector<1x96x168xbf16>
      %71 = vector.shape_cast %70 : vector<1x96x168xbf16> to vector<96x168xbf16>
      %72 = arith.truncf %69 : vector<28x96xf32> to vector<28x96xbf16>
      %cst_59 = arith.constant dense<0.000000e+00> : vector<28x168xf32>
      %73 = tpu.matmul %72, %71, %cst_59 {dimension_numbers = #tpu.dot_dimension_numbers<[1], [0], [0], [1], [0, 0, 1, 1], [], []>} : vector<28x96xbf16>, vector<96x168xbf16>, vector<28x168xf32> -> vector<28x168xf32>
      %74 = arith.addf %68, %73 : vector<28x168xf32>
      %75 = vector.extract_strided_slice %57 {offsets = [3, 0], sizes = [28, 96], strides = [1, 1]} : vector<32x96xf32> to vector<28x96xf32>
      %c3_60 = arith.constant 3 : index
      %c0_61 = arith.constant 0 : index
      %c0_62 = arith.constant 0 : index
      %76 = vector.load %arg2[%c3_60, %c0_61, %c0_62] : memref<5x96x168xbf16, #tpu.memory_space<vmem>>, vector<1x96x168xbf16>
      %77 = vector.shape_cast %76 : vector<1x96x168xbf16> to vector<96x168xbf16>
      %78 = arith.truncf %75 : vector<28x96xf32> to vector<28x96xbf16>
      %cst_63 = arith.constant dense<0.000000e+00> : vector<28x168xf32>
      %79 = tpu.matmul %78, %77, %cst_63 {dimension_numbers = #tpu.dot_dimension_numbers<[1], [0], [0], [1], [0, 0, 1, 1], [], []>} : vector<28x96xbf16>, vector<96x168xbf16>, vector<28x168xf32> -> vector<28x168xf32>
      %80 = arith.addf %74, %79 : vector<28x168xf32>
      %81 = vector.extract_strided_slice %57 {offsets = [4, 0], sizes = [28, 96], strides = [1, 1]} : vector<32x96xf32> to vector<28x96xf32>
      %c4_64 = arith.constant 4 : index
      %c0_65 = arith.constant 0 : index
      %c0_66 = arith.constant 0 : index
      %82 = vector.load %arg2[%c4_64, %c0_65, %c0_66] : memref<5x96x168xbf16, #tpu.memory_space<vmem>>, vector<1x96x168xbf16>
      %83 = vector.shape_cast %82 : vector<1x96x168xbf16> to vector<96x168xbf16>
      %84 = arith.truncf %81 : vector<28x96xf32> to vector<28x96xbf16>
      %cst_67 = arith.constant dense<0.000000e+00> : vector<28x168xf32>
      %85 = tpu.matmul %84, %83, %cst_67 {dimension_numbers = #tpu.dot_dimension_numbers<[1], [0], [0], [1], [0, 0, 1, 1], [], []>} : vector<28x96xbf16>, vector<96x168xbf16>, vector<28x168xf32> -> vector<28x168xf32>
      %86 = arith.addf %80, %85 : vector<28x168xf32>
      %c0_68 = arith.constant 0 : index
      %c0_69 = arith.constant 0 : index
      %87 = vector.load %arg3[%c0_68, %c0_69] : memref<1x168xf32, #tpu.memory_space<vmem>>, vector<1x168xf32>
      %88 = vector.broadcast %87 : vector<1x168xf32> to vector<28x168xf32>
      %89 = arith.addf %86, %88 : vector<28x168xf32>
      %cst_70 = arith.constant 0.000000e+00 : f32
      %90 = vector.broadcast %cst_70 : f32 to vector<28x168xf32>
      %91 = arith.maximumf %89, %90 : vector<28x168xf32>
      %c0_71 = arith.constant 0 : index
      %c0_72 = arith.constant 0 : index
      %92 = vector.load %arg4[%c0_71, %c0_72] : memref<14x28xbf16, #tpu.memory_space<vmem>>, vector<14x28xbf16>
      %93 = arith.truncf %91 : vector<28x168xf32> to vector<28x168xbf16>
      %cst_73 = arith.constant dense<0.000000e+00> : vector<14x168xf32>
      %94 = tpu.matmul %92, %93, %cst_73 {dimension_numbers = #tpu.dot_dimension_numbers<[1], [0], [0], [1], [0, 0, 1, 1], [], []>} : vector<14x28xbf16>, vector<28x168xbf16>, vector<14x168xf32> -> vector<14x168xf32>
      %c0_74 = arith.constant 0 : index
      %c0_75 = arith.constant 0 : index
      %95 = vector.load %arg5[%c0_74, %c0_75] : memref<14x28xbf16, #tpu.memory_space<vmem>>, vector<14x28xbf16>
      %96 = arith.truncf %91 : vector<28x168xf32> to vector<28x168xbf16>
      %cst_76 = arith.constant dense<0.000000e+00> : vector<14x168xf32>
      %97 = tpu.matmul %95, %96, %cst_76 {dimension_numbers = #tpu.dot_dimension_numbers<[1], [0], [0], [1], [0, 0, 1, 1], [], []>} : vector<14x28xbf16>, vector<28x168xbf16>, vector<14x168xf32> -> vector<14x168xf32>
      %98 = arith.maximumf %94, %97 : vector<14x168xf32>
      %c0_77 = arith.constant 0 : index
      %c0_78 = arith.constant 0 : index
      %99 = vector.load %arg6[%c0_77, %c0_78] : memref<168x84xbf16, #tpu.memory_space<vmem>>, vector<168x84xbf16>
      %100 = arith.truncf %98 : vector<14x168xf32> to vector<14x168xbf16>
      %cst_79 = arith.constant dense<0.000000e+00> : vector<14x84xf32>
      %101 = tpu.matmul %100, %99, %cst_79 {dimension_numbers = #tpu.dot_dimension_numbers<[1], [0], [0], [1], [0, 0, 1, 1], [], []>} : vector<14x168xbf16>, vector<168x84xbf16>, vector<14x84xf32> -> vector<14x84xf32>
      %c0_80 = arith.constant 0 : index
      %c0_81 = arith.constant 0 : index
      %102 = vector.load %arg7[%c0_80, %c0_81] : memref<168x84xbf16, #tpu.memory_space<vmem>>, vector<168x84xbf16>
      %103 = arith.truncf %98 : vector<14x168xf32> to vector<14x168xbf16>
      %cst_82 = arith.constant dense<0.000000e+00> : vector<14x84xf32>
      %104 = tpu.matmul %103, %102, %cst_82 {dimension_numbers = #tpu.dot_dimension_numbers<[1], [0], [0], [1], [0, 0, 1, 1], [], []>} : vector<14x168xbf16>, vector<168x84xbf16>, vector<14x84xf32> -> vector<14x84xf32>
      %105 = arith.maximumf %101, %104 : vector<14x84xf32>
      %106 = vector.extract_strided_slice %105 {offsets = [0, 0], sizes = [10, 84], strides = [1, 1]} : vector<14x84xf32> to vector<10x84xf32>
      %c0_83 = arith.constant 0 : index
      %c0_84 = arith.constant 0 : index
      %c0_85 = arith.constant 0 : index
      %107 = vector.load %arg8[%c0_83, %c0_84, %c0_85] : memref<5x84x160xbf16, #tpu.memory_space<vmem>>, vector<1x84x160xbf16>
      %108 = vector.shape_cast %107 : vector<1x84x160xbf16> to vector<84x160xbf16>
      %109 = arith.truncf %106 : vector<10x84xf32> to vector<10x84xbf16>
      %cst_86 = arith.constant dense<0.000000e+00> : vector<10x160xf32>
      %110 = tpu.matmul %109, %108, %cst_86 {dimension_numbers = #tpu.dot_dimension_numbers<[1], [0], [0], [1], [0, 0, 1, 1], [], []>} : vector<10x84xbf16>, vector<84x160xbf16>, vector<10x160xf32> -> vector<10x160xf32>
      %111 = vector.extract_strided_slice %105 {offsets = [1, 0], sizes = [10, 84], strides = [1, 1]} : vector<14x84xf32> to vector<10x84xf32>
      %c1_87 = arith.constant 1 : index
      %c0_88 = arith.constant 0 : index
      %c0_89 = arith.constant 0 : index
      %112 = vector.load %arg8[%c1_87, %c0_88, %c0_89] : memref<5x84x160xbf16, #tpu.memory_space<vmem>>, vector<1x84x160xbf16>
      %113 = vector.shape_cast %112 : vector<1x84x160xbf16> to vector<84x160xbf16>
      %114 = arith.truncf %111 : vector<10x84xf32> to vector<10x84xbf16>
      %cst_90 = arith.constant dense<0.000000e+00> : vector<10x160xf32>
      %115 = tpu.matmul %114, %113, %cst_90 {dimension_numbers = #tpu.dot_dimension_numbers<[1], [0], [0], [1], [0, 0, 1, 1], [], []>} : vector<10x84xbf16>, vector<84x160xbf16>, vector<10x160xf32> -> vector<10x160xf32>
      %116 = arith.addf %110, %115 : vector<10x160xf32>
      %117 = vector.extract_strided_slice %105 {offsets = [2, 0], sizes = [10, 84], strides = [1, 1]} : vector<14x84xf32> to vector<10x84xf32>
      %c2_91 = arith.constant 2 : index
      %c0_92 = arith.constant 0 : index
      %c0_93 = arith.constant 0 : index
      %118 = vector.load %arg8[%c2_91, %c0_92, %c0_93] : memref<5x84x160xbf16, #tpu.memory_space<vmem>>, vector<1x84x160xbf16>
      %119 = vector.shape_cast %118 : vector<1x84x160xbf16> to vector<84x160xbf16>
      %120 = arith.truncf %117 : vector<10x84xf32> to vector<10x84xbf16>
      %cst_94 = arith.constant dense<0.000000e+00> : vector<10x160xf32>
      %121 = tpu.matmul %120, %119, %cst_94 {dimension_numbers = #tpu.dot_dimension_numbers<[1], [0], [0], [1], [0, 0, 1, 1], [], []>} : vector<10x84xbf16>, vector<84x160xbf16>, vector<10x160xf32> -> vector<10x160xf32>
      %122 = arith.addf %116, %121 : vector<10x160xf32>
      %123 = vector.extract_strided_slice %105 {offsets = [3, 0], sizes = [10, 84], strides = [1, 1]} : vector<14x84xf32> to vector<10x84xf32>
      %c3_95 = arith.constant 3 : index
      %c0_96 = arith.constant 0 : index
      %c0_97 = arith.constant 0 : index
      %124 = vector.load %arg8[%c3_95, %c0_96, %c0_97] : memref<5x84x160xbf16, #tpu.memory_space<vmem>>, vector<1x84x160xbf16>
      %125 = vector.shape_cast %124 : vector<1x84x160xbf16> to vector<84x160xbf16>
      %126 = arith.truncf %123 : vector<10x84xf32> to vector<10x84xbf16>
      %cst_98 = arith.constant dense<0.000000e+00> : vector<10x160xf32>
      %127 = tpu.matmul %126, %125, %cst_98 {dimension_numbers = #tpu.dot_dimension_numbers<[1], [0], [0], [1], [0, 0, 1, 1], [], []>} : vector<10x84xbf16>, vector<84x160xbf16>, vector<10x160xf32> -> vector<10x160xf32>
      %128 = arith.addf %122, %127 : vector<10x160xf32>
      %129 = vector.extract_strided_slice %105 {offsets = [4, 0], sizes = [10, 84], strides = [1, 1]} : vector<14x84xf32> to vector<10x84xf32>
      %c4_99 = arith.constant 4 : index
      %c0_100 = arith.constant 0 : index
      %c0_101 = arith.constant 0 : index
      %130 = vector.load %arg8[%c4_99, %c0_100, %c0_101] : memref<5x84x160xbf16, #tpu.memory_space<vmem>>, vector<1x84x160xbf16>
      %131 = vector.shape_cast %130 : vector<1x84x160xbf16> to vector<84x160xbf16>
      %132 = arith.truncf %129 : vector<10x84xf32> to vector<10x84xbf16>
      %cst_102 = arith.constant dense<0.000000e+00> : vector<10x160xf32>
      %133 = tpu.matmul %132, %131, %cst_102 {dimension_numbers = #tpu.dot_dimension_numbers<[1], [0], [0], [1], [0, 0, 1, 1], [], []>} : vector<10x84xbf16>, vector<84x160xbf16>, vector<10x160xf32> -> vector<10x160xf32>
      %134 = arith.addf %128, %133 : vector<10x160xf32>
      %c0_103 = arith.constant 0 : index
      %c0_104 = arith.constant 0 : index
      %135 = vector.load %arg9[%c0_103, %c0_104] : memref<1x160xf32, #tpu.memory_space<vmem>>, vector<1x160xf32>
      %136 = vector.broadcast %135 : vector<1x160xf32> to vector<10x160xf32>
      %137 = arith.addf %134, %136 : vector<10x160xf32>
      %cst_105 = arith.constant 0.000000e+00 : f32
      %138 = vector.broadcast %cst_105 : f32 to vector<10x160xf32>
      %139 = arith.maximumf %137, %138 : vector<10x160xf32>
      %c0_106 = arith.constant 0 : index
      %c0_107 = arith.constant 0 : index
      %140 = vector.load %arg10[%c0_106, %c0_107] : memref<5x10xbf16, #tpu.memory_space<vmem>>, vector<5x10xbf16>
      %141 = arith.truncf %139 : vector<10x160xf32> to vector<10x160xbf16>
      %cst_108 = arith.constant dense<0.000000e+00> : vector<5x160xf32>
      %142 = tpu.matmul %140, %141, %cst_108 {dimension_numbers = #tpu.dot_dimension_numbers<[1], [0], [0], [1], [0, 0, 1, 1], [], []>} : vector<5x10xbf16>, vector<10x160xbf16>, vector<5x160xf32> -> vector<5x160xf32>
      %c0_109 = arith.constant 0 : index
      %c0_110 = arith.constant 0 : index
      %143 = vector.load %arg11[%c0_109, %c0_110] : memref<5x10xbf16, #tpu.memory_space<vmem>>, vector<5x10xbf16>
      %144 = arith.truncf %139 : vector<10x160xf32> to vector<10x160xbf16>
      %cst_111 = arith.constant dense<0.000000e+00> : vector<5x160xf32>
      %145 = tpu.matmul %143, %144, %cst_111 {dimension_numbers = #tpu.dot_dimension_numbers<[1], [0], [0], [1], [0, 0, 1, 1], [], []>} : vector<5x10xbf16>, vector<10x160xbf16>, vector<5x160xf32> -> vector<5x160xf32>
      %146 = arith.maximumf %142, %145 : vector<5x160xf32>
      %c0_112 = arith.constant 0 : index
      %c0_113 = arith.constant 0 : index
      %147 = vector.load %arg12[%c0_112, %c0_113] : memref<160x80xbf16, #tpu.memory_space<vmem>>, vector<160x80xbf16>
      %148 = arith.truncf %146 : vector<5x160xf32> to vector<5x160xbf16>
      %cst_114 = arith.constant dense<0.000000e+00> : vector<5x80xf32>
      %149 = tpu.matmul %148, %147, %cst_114 {dimension_numbers = #tpu.dot_dimension_numbers<[1], [0], [0], [1], [0, 0, 1, 1], [], []>} : vector<5x160xbf16>, vector<160x80xbf16>, vector<5x80xf32> -> vector<5x80xf32>
      %c0_115 = arith.constant 0 : index
      %c0_116 = arith.constant 0 : index
      %150 = vector.load %arg13[%c0_115, %c0_116] : memref<160x80xbf16, #tpu.memory_space<vmem>>, vector<160x80xbf16>
      %151 = arith.truncf %146 : vector<5x160xf32> to vector<5x160xbf16>
      %cst_117 = arith.constant dense<0.000000e+00> : vector<5x80xf32>
      %152 = tpu.matmul %151, %150, %cst_117 {dimension_numbers = #tpu.dot_dimension_numbers<[1], [0], [0], [1], [0, 0, 1, 1], [], []>} : vector<5x160xbf16>, vector<160x80xbf16>, vector<5x80xf32> -> vector<5x80xf32>
      %153 = arith.maximumf %149, %152 : vector<5x80xf32>
      %154 = vector.extract_strided_slice %153 {offsets = [0, 0], sizes = [1, 80], strides = [1, 1]} : vector<5x80xf32> to vector<1x80xf32>
      %c0_118 = arith.constant 0 : index
      %155 = arith.index_cast %arg22 : i32 to index
      %c0_119 = arith.constant 0 : index
      %156 = vector.load %arg21[%c0_118, %155, %c0_119] : memref<5x8x80xf32, #tpu.memory_space<vmem>>, vector<1x1x80xf32>
      %157 = vector.shape_cast %156 : vector<1x1x80xf32> to vector<1x80xf32>
      %158 = vector.shape_cast %154 : vector<1x80xf32> to vector<1x1x80xf32>
      tpu.vector_store %arg21[%c0_118, %155, %c0_119], %158 {strides = array<i32>} : memref<5x8x80xf32, #tpu.memory_space<vmem>>, vector<1x1x80xf32>,
      %159 = vector.extract_strided_slice %153 {offsets = [1, 0], sizes = [1, 80], strides = [1, 1]} : vector<5x80xf32> to vector<1x80xf32>
      %c1_120 = arith.constant 1 : index
      %160 = arith.index_cast %arg22 : i32 to index
      %c0_121 = arith.constant 0 : index
      %161 = vector.load %arg21[%c1_120, %160, %c0_121] : memref<5x8x80xf32, #tpu.memory_space<vmem>>, vector<1x1x80xf32>
      %162 = vector.shape_cast %161 : vector<1x1x80xf32> to vector<1x80xf32>
      %163 = vector.shape_cast %159 : vector<1x80xf32> to vector<1x1x80xf32>
      tpu.vector_store %arg21[%c1_120, %160, %c0_121], %163 {strides = array<i32>} : memref<5x8x80xf32, #tpu.memory_space<vmem>>, vector<1x1x80xf32>,
      %164 = vector.extract_strided_slice %153 {offsets = [2, 0], sizes = [1, 80], strides = [1, 1]} : vector<5x80xf32> to vector<1x80xf32>
      %c2_122 = arith.constant 2 : index
      %165 = arith.index_cast %arg22 : i32 to index
      %c0_123 = arith.constant 0 : index
      %166 = vector.load %arg21[%c2_122, %165, %c0_123] : memref<5x8x80xf32, #tpu.memory_space<vmem>>, vector<1x1x80xf32>
      %167 = vector.shape_cast %166 : vector<1x1x80xf32> to vector<1x80xf32>
      %168 = vector.shape_cast %164 : vector<1x80xf32> to vector<1x1x80xf32>
      tpu.vector_store %arg21[%c2_122, %165, %c0_123], %168 {strides = array<i32>} : memref<5x8x80xf32, #tpu.memory_space<vmem>>, vector<1x1x80xf32>,
      %169 = vector.extract_strided_slice %153 {offsets = [3, 0], sizes = [1, 80], strides = [1, 1]} : vector<5x80xf32> to vector<1x80xf32>
      %c3_124 = arith.constant 3 : index
      %170 = arith.index_cast %arg22 : i32 to index
      %c0_125 = arith.constant 0 : index
      %171 = vector.load %arg21[%c3_124, %170, %c0_125] : memref<5x8x80xf32, #tpu.memory_space<vmem>>, vector<1x1x80xf32>
      %172 = vector.shape_cast %171 : vector<1x1x80xf32> to vector<1x80xf32>
      %173 = vector.shape_cast %169 : vector<1x80xf32> to vector<1x1x80xf32>
      tpu.vector_store %arg21[%c3_124, %170, %c0_125], %173 {strides = array<i32>} : memref<5x8x80xf32, #tpu.memory_space<vmem>>, vector<1x1x80xf32>,
      %174 = vector.extract_strided_slice %153 {offsets = [4, 0], sizes = [1, 80], strides = [1, 1]} : vector<5x80xf32> to vector<1x80xf32>
      %c4_126 = arith.constant 4 : index
      %175 = arith.index_cast %arg22 : i32 to index
      %c0_127 = arith.constant 0 : index
      %176 = vector.load %arg21[%c4_126, %175, %c0_127] : memref<5x8x80xf32, #tpu.memory_space<vmem>>, vector<1x1x80xf32>
      %177 = vector.shape_cast %176 : vector<1x1x80xf32> to vector<1x80xf32>
      %178 = vector.shape_cast %174 : vector<1x80xf32> to vector<1x1x80xf32>
      tpu.vector_store %arg21[%c4_126, %175, %c0_127], %178 {strides = array<i32>} : memref<5x8x80xf32, #tpu.memory_space<vmem>>, vector<1x1x80xf32>,
    }
    %c8_i32_0 = arith.constant 8 : i32
    %c0 = arith.constant 0 : index
    %c0_1 = arith.constant 0 : index
    %c0_2 = arith.constant 0 : index
    %1 = vector.load %arg21[%c0, %c0_1, %c0_2] : memref<5x8x80xf32, #tpu.memory_space<vmem>>, vector<1x8x80xf32>
    %2 = vector.shape_cast %1 : vector<1x8x80xf32> to vector<8x80xf32>
    %c0_3 = arith.constant 0 : index
    %c0_4 = arith.constant 0 : index
    %c0_5 = arith.constant 0 : index
    %3 = vector.load %arg14[%c0_3, %c0_4, %c0_5] : memref<5x80x120xbf16, #tpu.memory_space<vmem>>, vector<1x80x120xbf16>
    %4 = vector.shape_cast %3 : vector<1x80x120xbf16> to vector<80x120xbf16>
    %5 = arith.truncf %2 : vector<8x80xf32> to vector<8x80xbf16>
    %cst = arith.constant dense<0.000000e+00> : vector<8x120xf32>
    %6 = tpu.matmul %5, %4, %cst {dimension_numbers = #tpu.dot_dimension_numbers<[1], [0], [0], [1], [0, 0, 1, 1], [], []>} : vector<8x80xbf16>, vector<80x120xbf16>, vector<8x120xf32> -> vector<8x120xf32>
    %c1 = arith.constant 1 : index
    %c0_6 = arith.constant 0 : index
    %c0_7 = arith.constant 0 : index
    %7 = vector.load %arg21[%c1, %c0_6, %c0_7] : memref<5x8x80xf32, #tpu.memory_space<vmem>>, vector<1x8x80xf32>
    %8 = vector.shape_cast %7 : vector<1x8x80xf32> to vector<8x80xf32>
    %c1_8 = arith.constant 1 : index
    %c0_9 = arith.constant 0 : index
    %c0_10 = arith.constant 0 : index
    %9 = vector.load %arg14[%c1_8, %c0_9, %c0_10] : memref<5x80x120xbf16, #tpu.memory_space<vmem>>, vector<1x80x120xbf16>
    %10 = vector.shape_cast %9 : vector<1x80x120xbf16> to vector<80x120xbf16>
    %11 = arith.truncf %8 : vector<8x80xf32> to vector<8x80xbf16>
    %cst_11 = arith.constant dense<0.000000e+00> : vector<8x120xf32>
    %12 = tpu.matmul %11, %10, %cst_11 {dimension_numbers = #tpu.dot_dimension_numbers<[1], [0], [0], [1], [0, 0, 1, 1], [], []>} : vector<8x80xbf16>, vector<80x120xbf16>, vector<8x120xf32> -> vector<8x120xf32>
    %13 = arith.addf %6, %12 : vector<8x120xf32>
    %c2 = arith.constant 2 : index
    %c0_12 = arith.constant 0 : index
    %c0_13 = arith.constant 0 : index
    %14 = vector.load %arg21[%c2, %c0_12, %c0_13] : memref<5x8x80xf32, #tpu.memory_space<vmem>>, vector<1x8x80xf32>
    %15 = vector.shape_cast %14 : vector<1x8x80xf32> to vector<8x80xf32>
    %c2_14 = arith.constant 2 : index
    %c0_15 = arith.constant 0 : index
    %c0_16 = arith.constant 0 : index
    %16 = vector.load %arg14[%c2_14, %c0_15, %c0_16] : memref<5x80x120xbf16, #tpu.memory_space<vmem>>, vector<1x80x120xbf16>
    %17 = vector.shape_cast %16 : vector<1x80x120xbf16> to vector<80x120xbf16>
    %18 = arith.truncf %15 : vector<8x80xf32> to vector<8x80xbf16>
    %cst_17 = arith.constant dense<0.000000e+00> : vector<8x120xf32>
    %19 = tpu.matmul %18, %17, %cst_17 {dimension_numbers = #tpu.dot_dimension_numbers<[1], [0], [0], [1], [0, 0, 1, 1], [], []>} : vector<8x80xbf16>, vector<80x120xbf16>, vector<8x120xf32> -> vector<8x120xf32>
    %20 = arith.addf %13, %19 : vector<8x120xf32>
    %c3 = arith.constant 3 : index
    %c0_18 = arith.constant 0 : index
    %c0_19 = arith.constant 0 : index
    %21 = vector.load %arg21[%c3, %c0_18, %c0_19] : memref<5x8x80xf32, #tpu.memory_space<vmem>>, vector<1x8x80xf32>
    %22 = vector.shape_cast %21 : vector<1x8x80xf32> to vector<8x80xf32>
    %c3_20 = arith.constant 3 : index
    %c0_21 = arith.constant 0 : index
    %c0_22 = arith.constant 0 : index
    %23 = vector.load %arg14[%c3_20, %c0_21, %c0_22] : memref<5x80x120xbf16, #tpu.memory_space<vmem>>, vector<1x80x120xbf16>
    %24 = vector.shape_cast %23 : vector<1x80x120xbf16> to vector<80x120xbf16>
    %25 = arith.truncf %22 : vector<8x80xf32> to vector<8x80xbf16>
    %cst_23 = arith.constant dense<0.000000e+00> : vector<8x120xf32>
    %26 = tpu.matmul %25, %24, %cst_23 {dimension_numbers = #tpu.dot_dimension_numbers<[1], [0], [0], [1], [0, 0, 1, 1], [], []>} : vector<8x80xbf16>, vector<80x120xbf16>, vector<8x120xf32> -> vector<8x120xf32>
    %27 = arith.addf %20, %26 : vector<8x120xf32>
    %c4 = arith.constant 4 : index
    %c0_24 = arith.constant 0 : index
    %c0_25 = arith.constant 0 : index
    %28 = vector.load %arg21[%c4, %c0_24, %c0_25] : memref<5x8x80xf32, #tpu.memory_space<vmem>>, vector<1x8x80xf32>
    %29 = vector.shape_cast %28 : vector<1x8x80xf32> to vector<8x80xf32>
    %c4_26 = arith.constant 4 : index
    %c0_27 = arith.constant 0 : index
    %c0_28 = arith.constant 0 : index
    %30 = vector.load %arg14[%c4_26, %c0_27, %c0_28] : memref<5x80x120xbf16, #tpu.memory_space<vmem>>, vector<1x80x120xbf16>
    %31 = vector.shape_cast %30 : vector<1x80x120xbf16> to vector<80x120xbf16>
    %32 = arith.truncf %29 : vector<8x80xf32> to vector<8x80xbf16>
    %cst_29 = arith.constant dense<0.000000e+00> : vector<8x120xf32>
    %33 = tpu.matmul %32, %31, %cst_29 {dimension_numbers = #tpu.dot_dimension_numbers<[1], [0], [0], [1], [0, 0, 1, 1], [], []>} : vector<8x80xbf16>, vector<80x120xbf16>, vector<8x120xf32> -> vector<8x120xf32>
    %34 = arith.addf %27, %33 : vector<8x120xf32>
    %c0_30 = arith.constant 0 : index
    %c0_31 = arith.constant 0 : index
    %35 = vector.load %arg15[%c0_30, %c0_31] : memref<1x120xf32, #tpu.memory_space<vmem>>, vector<1x120xf32>
    %36 = vector.broadcast %35 : vector<1x120xf32> to vector<8x120xf32>
    %37 = arith.addf %34, %36 : vector<8x120xf32>
    %cst_32 = arith.constant 0.000000e+00 : f32
    %38 = vector.broadcast %cst_32 : f32 to vector<8x120xf32>
    %39 = arith.maximumf %37, %38 : vector<8x120xf32>
    %c0_33 = arith.constant 0 : index
    %c0_34 = arith.constant 0 : index
    %40 = vector.load %arg16[%c0_33, %c0_34] : memref<120x84xbf16, #tpu.memory_space<vmem>>, vector<120x84xbf16>
    %41 = arith.truncf %39 : vector<8x120xf32> to vector<8x120xbf16>
    %cst_35 = arith.constant dense<0.000000e+00> : vector<8x84xf32>
    %42 = tpu.matmul %41, %40, %cst_35 {dimension_numbers = #tpu.dot_dimension_numbers<[1], [0], [0], [1], [0, 0, 1, 1], [], []>} : vector<8x120xbf16>, vector<120x84xbf16>, vector<8x84xf32> -> vector<8x84xf32>
    %c0_36 = arith.constant 0 : index
    %c0_37 = arith.constant 0 : index
    %43 = vector.load %arg17[%c0_36, %c0_37] : memref<1x84xf32, #tpu.memory_space<vmem>>, vector<1x84xf32>
    %44 = vector.broadcast %43 : vector<1x84xf32> to vector<8x84xf32>
    %45 = arith.addf %42, %44 : vector<8x84xf32>
    %cst_38 = arith.constant 0.000000e+00 : f32
    %46 = vector.broadcast %cst_38 : f32 to vector<8x84xf32>
    %47 = arith.maximumf %45, %46 : vector<8x84xf32>
    %c0_39 = arith.constant 0 : index
    %c0_40 = arith.constant 0 : index
    %48 = vector.load %arg18[%c0_39, %c0_40] : memref<84x128xbf16, #tpu.memory_space<vmem>>, vector<84x128xbf16>
    %49 = arith.truncf %47 : vector<8x84xf32> to vector<8x84xbf16>
    %cst_41 = arith.constant dense<0.000000e+00> : vector<8x128xf32>
    %50 = tpu.matmul %49, %48, %cst_41 {dimension_numbers = #tpu.dot_dimension_numbers<[1], [0], [0], [1], [0, 0, 1, 1], [], []>} : vector<8x84xbf16>, vector<84x128xbf16>, vector<8x128xf32> -> vector<8x128xf32>
    %c0_42 = arith.constant 0 : index
    %c0_43 = arith.constant 0 : index
    %51 = vector.load %arg19[%c0_42, %c0_43] : memref<1x128xf32, #tpu.memory_space<vmem>>, vector<1x128xf32>
    %52 = vector.broadcast %51 : vector<1x128xf32> to vector<8x128xf32>
    %53 = arith.addf %50, %52 : vector<8x128xf32>
    %c0_44 = arith.constant 0 : index
    %c0_45 = arith.constant 0 : index
    %54 = vector.load %arg20[%c0_44, %c0_45] : memref<8x128xf32, #tpu.memory_space<vmem>>, vector<8x128xf32>
    tpu.vector_store %arg20[%c0_44, %c0_45], %53 {strides = array<i32>} : memref<8x128xf32, #tpu.memory_space<vmem>>, vector<8x128xf32>,
    return
  }
  func.func @transform_0(%arg0: i32) -> (i32, i32, i32) {
    %c0_i32 = arith.constant 0 : i32
    %c0_i32_0 = arith.constant 0 : i32
    %c0_i32_1 = arith.constant 0 : i32
    return %arg0, %c0_i32, %c0_i32_0 : i32, i32, i32
  }
  func.func @transform_1(%arg0: i32) -> (i32, i32, i32) {
    %c0_i32 = arith.constant 0 : i32
    %c0_i32_0 = arith.constant 0 : i32
    %c0_i32_1 = arith.constant 0 : i32
    %c0_i32_2 = arith.constant 0 : i32
    return %c0_i32, %c0_i32_0, %c0_i32_1 : i32, i32, i32
  }
  func.func @transform_2(%arg0: i32) -> (i32, i32) {
    %c0_i32 = arith.constant 0 : i32
    %c0_i32_0 = arith.constant 0 : i32
    %c0_i32_1 = arith.constant 0 : i32
    return %c0_i32, %c0_i32_0 : i32, i32
  }
  func.func @transform_3(%arg0: i32) -> (i32, i32) {
    %c0_i32 = arith.constant 0 : i32
    %c0_i32_0 = arith.constant 0 : i32
    %c0_i32_1 = arith.constant 0 : i32
    return %c0_i32, %c0_i32_0 : i32, i32
  }
  func.func @transform_4(%arg0: i32) -> (i32, i32) {
    %c0_i32 = arith.constant 0 : i32
    %c0_i32_0 = arith.constant 0 : i32
    %c0_i32_1 = arith.constant 0 : i32
    return %c0_i32, %c0_i32_0 : i32, i32
  }
  func.func @transform_5(%arg0: i32) -> (i32, i32) {
    %c0_i32 = arith.constant 0 : i32
    %c0_i32_0 = arith.constant 0 : i32
    %c0_i32_1 = arith.constant 0 : i32
    return %c0_i32, %c0_i32_0 : i32, i32
  }
  func.func @transform_6(%arg0: i32) -> (i32, i32) {
    %c0_i32 = arith.constant 0 : i32
    %c0_i32_0 = arith.constant 0 : i32
    %c0_i32_1 = arith.constant 0 : i32
    return %c0_i32, %c0_i32_0 : i32, i32
  }
  func.func @transform_7(%arg0: i32) -> (i32, i32, i32) {
    %c0_i32 = arith.constant 0 : i32
    %c0_i32_0 = arith.constant 0 : i32
    %c0_i32_1 = arith.constant 0 : i32
    %c0_i32_2 = arith.constant 0 : i32
    return %c0_i32, %c0_i32_0, %c0_i32_1 : i32, i32, i32
  }
  func.func @transform_8(%arg0: i32) -> (i32, i32) {
    %c0_i32 = arith.constant 0 : i32
    %c0_i32_0 = arith.constant 0 : i32
    %c0_i32_1 = arith.constant 0 : i32
    return %c0_i32, %c0_i32_0 : i32, i32
  }
  func.func @transform_9(%arg0: i32) -> (i32, i32) {
    %c0_i32 = arith.constant 0 : i32
    %c0_i32_0 = arith.constant 0 : i32
    %c0_i32_1 = arith.constant 0 : i32
    return %c0_i32, %c0_i32_0 : i32, i32
  }
  func.func @transform_10(%arg0: i32) -> (i32, i32) {
    %c0_i32 = arith.constant 0 : i32
    %c0_i32_0 = arith.constant 0 : i32
    %c0_i32_1 = arith.constant 0 : i32
    return %c0_i32, %c0_i32_0 : i32, i32
  }
  func.func @transform_11(%arg0: i32) -> (i32, i32) {
    %c0_i32 = arith.constant 0 : i32
    %c0_i32_0 = arith.constant 0 : i32
    %c0_i32_1 = arith.constant 0 : i32
    return %c0_i32, %c0_i32_0 : i32, i32
  }
  func.func @transform_12(%arg0: i32) -> (i32, i32) {
    %c0_i32 = arith.constant 0 : i32
    %c0_i32_0 = arith.constant 0 : i32
    %c0_i32_1 = arith.constant 0 : i32
    return %c0_i32, %c0_i32_0 : i32, i32
  }
  func.func @transform_13(%arg0: i32) -> (i32, i32, i32) {
    %c0_i32 = arith.constant 0 : i32
    %c0_i32_0 = arith.constant 0 : i32
    %c0_i32_1 = arith.constant 0 : i32
    %c0_i32_2 = arith.constant 0 : i32
    return %c0_i32, %c0_i32_0, %c0_i32_1 : i32, i32, i32
  }
  func.func @transform_14(%arg0: i32) -> (i32, i32) {
    %c0_i32 = arith.constant 0 : i32
    %c0_i32_0 = arith.constant 0 : i32
    %c0_i32_1 = arith.constant 0 : i32
    return %c0_i32, %c0_i32_0 : i32, i32
  }
  func.func @transform_15(%arg0: i32) -> (i32, i32) {
    %c0_i32 = arith.constant 0 : i32
    %c0_i32_0 = arith.constant 0 : i32
    %c0_i32_1 = arith.constant 0 : i32
    return %c0_i32, %c0_i32_0 : i32, i32
  }
  func.func @transform_16(%arg0: i32) -> (i32, i32) {
    %c0_i32 = arith.constant 0 : i32
    %c0_i32_0 = arith.constant 0 : i32
    %c0_i32_1 = arith.constant 0 : i32
    return %c0_i32, %c0_i32_0 : i32, i32
  }
  func.func @transform_17(%arg0: i32) -> (i32, i32) {
    %c0_i32 = arith.constant 0 : i32
    %c0_i32_0 = arith.constant 0 : i32
    %c0_i32_1 = arith.constant 0 : i32
    return %c0_i32, %c0_i32_0 : i32, i32
  }
  func.func @transform_18(%arg0: i32) -> (i32, i32) {
    %c0_i32 = arith.constant 0 : i32
    %c0_i32_0 = arith.constant 0 : i32
    %c0_i32_1 = arith.constant 0 : i32
    return %c0_i32, %c0_i32_0 : i32, i32
  }
  func.func @transform_19(%arg0: i32) -> (i32, i32) {
    %c0_i32 = arith.constant 0 : i32
    %c0_i32_0 = arith.constant 0 : i32
    return %arg0, %c0_i32 : i32, i32
  }
}

</mosaic_0001>

<bundles_post_ra>
// kernel: cifar_cnn_forward.1
= control target key start
LH: loop header
LB: loop body
LE: loop exit
PB: predicated region body
PF: predicated region fallthrough
CT: control target
= control target key end

     0   :  { %s5540_s0 = inlined_call_operand.vmem [shape: f32[16,32,96], index: 0, kind: input, shape index: {}]   ;;  %s5541_s1 = inlined_call_operand.vmem [shape: bf16[5,96,168], index: 1, kind: input, shape index: {}]   ;;  %s5542_s2 = inlined_call_operand.vmem [shape: f32[1,168], index: 2, kind: input, shape index: {}]   ;;  %s5543_s3 = inlined_call_operand.vmem [shape: bf16[14,28], index: 3, kind: input, shape index: {}]   ;;  %s5544_s4 = inlined_call_operand.vmem [shape: bf16[14,28], index: 4, kind: input, shape index: {}]   ;;  %s5545_s5 = inlined_call_operand.vmem [shape: bf16[168,84], index: 5, kind: input, shape index: {}]   ;;  %s5546_s6 = inlined_call_operand.vmem [shape: bf16[168,84], index: 6, kind: input, shape index: {}]   ;;  %s5547_s7 = inlined_call_operand.vmem [shape: bf16[5,84,160], index: 7, kind: input, shape index: {}]   ;;  %s5548_s8 = inlined_call_operand.vmem [shape: f32[1,160], index: 8, kind: input, shape index: {}]   ;;  %s5549_s9 = inlined_call_operand.vmem [shape: bf16[5,10], index: 9, kind: input, shape index: {}]   ;;  %s5550_s10 = inlined_call_operand.vmem [shape: bf16[5,10], index: 10, kind: input, shape index: {}]   ;;  %s5551_s11 = inlined_call_operand.vmem [shape: bf16[160,80], index: 11, kind: input, shape index: {}]   ;;  %s5552_s12 = inlined_call_operand.vmem [shape: bf16[160,80], index: 12, kind: input, shape index: {}]   ;;  %s5553_s13 = inlined_call_operand.vmem [shape: bf16[5,80,120], index: 13, kind: input, shape index: {}]   ;;  %s5554_s14 = inlined_call_operand.vmem [shape: f32[1,120], index: 14, kind: input, shape index: {}]   ;;  %s5555_s15 = inlined_call_operand.vmem [shape: bf16[120,84], index: 15, kind: input, shape index: {}]   ;;  %s5556_s16 = inlined_call_operand.vmem [shape: f32[1,84], index: 16, kind: input, shape index: {}]   ;;  %s5557_s17 = inlined_call_operand.vmem [shape: bf16[84,128], index: 17, kind: input, shape index: {}]   ;;  %s5558_s18 = inlined_call_operand.vmem [shape: f32[1,128], index: 18, kind: input, shape index: {}]   ;;  %s5559_s19 = inlined_call_operand.hbm [shape: f32[16,128], index: 19, kind: output, shape index: {}]  }
   0x1   :  { %5569 = sst [smem:[#allocation12_spill]] %s5540_s0 }
   0x2   :  { %5570 = sst [smem:[#allocation13_spill]] %s5541_s1 }
   0x3   :  { %5571 = sst [smem:[#allocation14_spill]] %s5542_s2 }
   0x4   :  { %5572 = sst [smem:[#allocation15_spill]] %s5543_s3 }
   0x5   :  { %5573 = sst [smem:[#allocation16_spill]] %s5558_s18 }
   0x6   :  { %5574 = sst [smem:[#allocation17_spill]] %s5559_s19 }
   0x7   :  { %24 = vsyncpa [#allocation4], 0 }
   0x8   :  { %26 = vsyncpa [#allocation4 + $0x1], 0  ;;  %s4593_s0 = smov 0   ;;  %s4595_s30 = smov 0  }
   0x9   :  { %s4597_s20 = smov 0   ;;  %s4599_s21 = smov 0  }
   0xa LB: > { %5575 = sst [smem:[#allocation6_spill]] %s4471_s0  ;;  %s4614_s1 = sadd.s32 4294967295, %s4483_s21   ;;  %s4483_s21 = sphi %s4599_s21, %s5597_s21   ;;  %s4479_s20 = sphi %s4597_s20, %s5599_s20   ;;  %s4475_s30 = sphi %s4595_s30, %s5601_s30   ;;  %s4471_s0 = sphi %s4593_s0, %s5600_s0  }
   0xb   : > { %5576 = sst [smem:[#allocation7_spill]] %s4479_s20  ;;  %s3514_s22 = sadd.s32 4294967294, %s4483_s21  }
   0xc   : > { %5577 = sst [smem:[#allocation8_spill]] %s4483_s21  ;;  %s4618_s2 = sadd.s32 1, %s4483_s21  }
   0xd   : > { %5578 = sst [smem:[#allocation9_spill]] %s4618_s2  ;;  %s443_s23 = sadd.s32 1, %s4479_s20 }
   0xe   : > { %s440_s24 = ssub.s32 %s4483_s21, %s4618_s2  ;;  %p453_p0 = scmp.ne.s32.totalorder %s4479_s20, %s4475_s30 }
   0xf   : > { %p441_p1 = scmp.eq.s32.totalorder %s440_s24, 0  ;;  %p454_p2 = scmp.eq.s32.totalorder %s4614_s1, 1 }
  0x10   : > { %p459_p3 = scmp.ne.s32.totalorder %s4475_s30, %s4471_s0  ;;  %p460_p4 = scmp.eq.s32.totalorder %s3514_s22, 1 }
  0x11   : > { %s4629_s25 = scalar_select %p441_p1, %s4479_s20, %s443_s23  }
  0x12   : > { %p4631_p5 = por %p454_p2, %p453_p0  ;;  %p4635_p6 = por %p460_p4, %p459_p3 }
  0x13   : > { %5579 = sst [smem:[#allocation10_spill]] %s4629_s25  ;;  %p3517_p7 = scmp.ge.s32.totalorder %s4483_s21, 1 }
  0x14   : > { %s5581_s26 = scalar_select %p4635_p6, 1, 0 }
  0x15   : > { %p542_p8 = scmp.lt.s32.totalorder %s4483_s21, 3 }
  0x16   : > { %5582 = sst [smem:[#allocation11_spill]] %s5581_s26 }
  0x17   : > { %p543_p9 = pnand %p3517_p7, %p542_p8 }
  0x18   : > { %s5565_s27 = sand.u32 (!%p543_p9), 1, %s4475_s30   ;;  %s3519_s28 = sshll.u32 (!%p543_p9), %s4614_s1, 3 }
  0x19   : > { %546 = sbr.rel (%p543_p9) target bundleno = 2412 (0x96c), region = 96  ;;  %s4645_s29 = sshll.u32 (!%p543_p9), %s5565_s27, 3 }
  0x1a   : > { %p600_p10 = scmp.lt.s32.totalorder (!%p543_p9), %s3519_s28, 15  ;;  %s5583_s25 = sld [smem:[#allocation12_spill]] (!%p543_p9) }
  0x1b   : > { %s4653_s26 = smov (!%p543_p9), 0  }
  0x20   : > { %s5603_s28 = smov (!%p600_p10, %s3519_s28), 15 }
  0x21   : > { %s3908_s22 = sshll.u32 %s5603_s28, 5 }
  0x22   : > { %s4650_s20 = scalar_lea.vmem %s5583_s25, %s3908_s22 }
  0x23 LB: >> { %s5584_s21 = sld [smem:[#allocation13_spill]]  ;;  %v4489_v2 = vmov 0   ;;  %s3522_s0 = sshll.u32 %s4487_s26, 5  ;;  %vm1058_vm0 = vsmask.f32 6400  ;;  %vm1206_vm1 = vcmask 1045504   ;;  %s4487_s26 = sphi %s4653_s26, %s612_s26  }
  0x24   : >> { %761 = vmatprep.mubr.bf16.mxu0 %v4489_v2  ;;  %1419 = vmatprep.mubr.bf16.mxu1 %v4489_v2  ;;  %s614_s27 = scalar_lea.vmem %s4650_s20, %s3522_s0  ;;  %vm646_vm2 = vsmask.f32 7424  ;;  %vm722_vm3 = vcmask 785408   ;;  %vm914_vm4 = vcmask 1046528   ;;  %s5586_s25 = sld [smem:[#allocation14_spill]]  ;;  %vm1376_vm5 = vcmask 228352  }
  0x25   : >> { %v615_v8 = vld [vmem:[%s614_s27] sm:$0xff]  ;;  %v616_v9 = vld [vmem:[%s614_s27 + $0x8] sm:$0xff]  ;;  %v617_v10 = vld [vmem:[%s614_s27 + $0x10] sm:$0xff]  ;;  %s5587_s24 = sld [smem:[#allocation15_spill]]  ;;  %vm1577_vm6 = vcmask 1043456   ;;  %vm1573_vm7 = vcmask 326656  }
  0x26   : >> { %v618_v11 = vld [vmem:[%s614_s27 + $0x18] sm:$0xff]  ;;  %v4683_v12 = vpack.c.bf16 %v616_v9, %v615_v8  ;;  %vm1842_vm8 = vcmask 1041408   ;;  %vm1838_vm9 = vcmask 687104   ;;  %vm2400_vm10 = vcmask 1044480  }
  0x27   : >> { %v4688_v14 = vpack.c.bf16 %v618_v11, %v617_v10  ;;  %vm2396_vm11 = vcmask 80896   ;;  %vm2577_vm12 = vcmask 261120   ;;  %vm2743_vm13 = vcmask 647168  }
  0x28   : >> { %v648_v16 = vshrl.u32 %v4683_v12, 16  ;;  %v650_v17 = vshll.u32 %v4683_v12, 16  ;;  %v1207_v29 = vrot.slane %v4683_v12, 2  ;;  %v915_v63 = vrot.slane %v4683_v12, 1 }
  0x29   : >> { %s5585_s19 = smov %s5584_s21  ;;  %v4159_v0 = vld [vmem:[%s5584_s21 + $0x64] ss:$8 sps:$4 sm:$0xff]   ;;  %v655_v18 = vshll.u32 %v4688_v14, 16  ;;  %v659_v19 = vshrl.u32 %v4688_v14, 16  ;;  %v1208_v30 = vrot.slane %v4688_v14, 2  ;;  %vm2747_vm14 = vcmask 648193  }
  0x2a   : >> { %v4161_v1 = vld [vmem:[%s5585_s19 + $0x60] ss:$8 sps:$4 sm:$0xff]   ;;  %729 = vmatprep.subr.bf16.mxu0 %v4159_v0  ;;  %v4162_v3 = vld [vmem:[%s5585_s19 + $0x74] ss:$8 sps:$4 sm:$0xff]   ;;  %v4164_v4 = vld [vmem:[%s5585_s19 + $0x70] ss:$8 sps:$4 sm:$0xff]  }
  0x2b   : >> { %730 = vmatpush1.bf16.msra.mxu0 %v4161_v1  ;;  %v4165_v5 = vld [vmem:[%s5585_s19 + $0x84] ss:$8 sps:$4 sm:$0xff]   ;;  %v4167_v6 = vld [vmem:[%s5585_s19 + $0x80] ss:$8 sps:$4 sm:$0xff]   ;;  %v4168_v7 = vld [vmem:[%s5585_s19 + $0x94] ss:$8 sps:$4 sm:$0xff]   ;;  %v4719_v36 = vsel %vm1206_vm1, %v1207_v29, %v1208_v30 }
  0x2c   : >> { %731 = vmatprep.subr.bf16.mxu0 %v4162_v3  ;;  %v4170_v13 = vld [vmem:[%s5585_s19 + $0x90] ss:$8 sps:$4 sm:$0xff]   ;;  %v4171_v15 = vld [vmem:[%s5585_s19 + $0xa4] ss:$8 sps:$4 sm:$0xff]   ;;  %v1059_v20 = vrot.slane %v648_v16, 1  ;;  %v1060_v21 = vrot.slane %v650_v17, 2 }
  0x2d   : >> { %v4173_v22 = vld [vmem:[%s5585_s19 + $0xa0] ss:$8 sps:$4 sm:$0xff]   ;;  %v652_v23 = vrot.slane %v650_v17, 1  ;;  %v1063_v24 = vrot.slane %v655_v18, 2  ;;  %v1062_v25 = vrot.slane %v659_v19, 1  ;;  %v657_v33 = vrot.slane %v655_v18, 1 }
  0x2e   : >> { %v4174_v26 = vld [vmem:[%s5585_s19 + $0xb4] ss:$8 sps:$4 sm:$0xff]   ;;  %v1061_v27 = vor.u32 %v1060_v21, %v1059_v20  ;;  %v4176_v31 = vld [vmem:[%s5585_s19 + $0xb0] ss:$8 sps:$4 sm:$0xff]   ;;  %v4179_v35 = vld [vmem:[%s5585_s19 + $0x4] ss:$8 sps:$4 sm:$0xff]  }
  0x2f   : >> { %732 = vmatpush1.bf16.msra.mxu0 %v4164_v4  ;;  %v4703_v28 = vor.u32 %v1063_v24, %v1062_v25  ;;  %v653_v32 = vor.u32 %v652_v23, %v648_v16  ;;  %v4177_v37 = vld [vmem:[%s5585_s19] ss:$8 sps:$4 sm:$0xff]   ;;  %v4182_v39 = vld [vmem:[%s5585_s19 + $0x14] ss:$8 sps:$4 sm:$0xff]   ;;  %v4180_v40 = vld [vmem:[%s5585_s19 + $0x10] ss:$8 sps:$4 sm:$0xff]   ;;  %v661_v42 = vor.u32 %v659_v19, %v657_v33 }
  0x30   : >> { %733 = vmatprep.subr.bf16.mxu0 %v4165_v5  ;;  %v4185_v41 = vld [vmem:[%s5585_s19 + $0x24] ss:$8 sps:$4 sm:$0xff]   ;;  %v4183_v43 = vld [vmem:[%s5585_s19 + $0x20] ss:$8 sps:$4 sm:$0xff]   ;;  %v4188_v44 = vld [vmem:[%s5585_s19 + $0x34] ss:$8 sps:$4 sm:$0xff]  }
  0x31   : >> { %v4711_v34 = vsel %vm1058_vm0, %v1061_v27, %v4703_v28  ;;  %v658_v38 = vsel %vm646_vm2, %v653_v32, %v657_v33  ;;  %v4186_v45 = vld [vmem:[%s5585_s19 + $0x30] ss:$8 sps:$4 sm:$0xff]   ;;  %v4191_v46 = vld [vmem:[%s5585_s19 + $0x44] ss:$8 sps:$4 sm:$0xff]   ;;  %v4189_v47 = vld [vmem:[%s5585_s19 + $0x40] ss:$8 sps:$4 sm:$0xff]   ;;  %v1339_v27 = vlaneseq }
  0x32   : >> { %v4194_v48 = vld [vmem:[%s5585_s19 + $0x54] ss:$8 sps:$4 sm:$0xff]   ;;  %v4192_v49 = vld [vmem:[%s5585_s19 + $0x50] ss:$8 sps:$4 sm:$0xff]   ;;  %v4197_v50 = vld [vmem:[%s5585_s19 + $0xc4] ss:$8 sps:$4 sm:$0xff]  }
  0x33   : >> { %734 = vmatpush1.bf16.msra.mxu0 %v4167_v6  ;;  %v4195_v51 = vld [vmem:[%s5585_s19 + $0xc0] ss:$8 sps:$4 sm:$0xff]   ;;  %v4200_v52 = vld [vmem:[%s5585_s19 + $0xd4] ss:$8 sps:$4 sm:$0xff]   ;;  %v4198_v53 = vld [vmem:[%s5585_s19 + $0xd0] ss:$8 sps:$4 sm:$0xff]  }
  0x34   : >> { %735 = vmatprep.subr.bf16.mxu0 %v4168_v7  ;;  %v4203_v54 = vld [vmem:[%s5585_s19 + $0xe4] ss:$8 sps:$4 sm:$0xff]   ;;  %v4201_v55 = vld [vmem:[%s5585_s19 + $0xe0] ss:$8 sps:$4 sm:$0xff]   ;;  %v4206_v56 = vld [vmem:[%s5585_s19 + $0xf4] ss:$8 sps:$4 sm:$0xff]  }
  0x35   : >> { %v4204_v57 = vld [vmem:[%s5585_s19 + $0xf0] ss:$8 sps:$4 sm:$0xff]   ;;  %v4209_v58 = vld [vmem:[%s5585_s19 + $0x104] ss:$8 sps:$4 sm:$0xff]   ;;  %v4207_v59 = vld [vmem:[%s5585_s19 + $0x100] ss:$8 sps:$4 sm:$0xff]  }
  0x36   : >> { %v4212_v60 = vld [vmem:[%s5585_s19 + $0x114] ss:$8 sps:$4 sm:$0xff]   ;;  %v4210_v61 = vld [vmem:[%s5585_s19 + $0x110] ss:$8 sps:$4 sm:$0xff]   ;;  %v4215_v62 = vld [vmem:[%s5585_s19 + $0x124] ss:$8 sps:$4 sm:$0xff]  }
  0x37   : >> { %736 = vmatpush1.bf16.msra.mxu0 %v4170_v13  ;;  %v916_v0 = vrot.slane %v4688_v14, 1  ;;  %v4213_v1 = vld [vmem:[%s5585_s19 + $0x120] ss:$8 sps:$4 sm:$0xff]   ;;  %v4218_v3 = vld [vmem:[%s5585_s19 + $0x134] ss:$8 sps:$4 sm:$0xff]   ;;  %vm2751_vm15 = vcmask 649218  }
  0x38   : >> { %737 = vmatprep.subr.bf16.mxu0 %v4171_v15  ;;  %v4216_v5 = vld [vmem:[%s5585_s19 + $0x130] ss:$8 sps:$4 sm:$0xff]   ;;  %v4221_v6 = vld [vmem:[%s5585_s19 + $0x144] ss:$8 sps:$4 sm:$0xff]   ;;  %v4219_v7 = vld [vmem:[%s5585_s19 + $0x140] ss:$8 sps:$4 sm:$0xff]  }
  0x39   : >> { %v917_v4 = vsel %vm914_vm4, %v915_v63, %v916_v0  ;;  %v4224_v8 = vld [vmem:[%s5585_s19 + $0x154] ss:$8 sps:$4 sm:$0xff]   ;;  %v4222_v9 = vld [vmem:[%s5585_s19 + $0x150] ss:$8 sps:$4 sm:$0xff]   ;;  %v4227_v10 = vld [vmem:[%s5585_s19 + $0x164] ss:$8 sps:$4 sm:$0xff]  }
  0x3a   : >> { %v4225_v11 = vld [vmem:[%s5585_s19 + $0x160] ss:$8 sps:$4 sm:$0xff]   ;;  %v4228_v13 = vld [vmem:[%s5585_s19 + $0x170] ss:$8 sps:$4 sm:$0xff]   ;;  %v4233_v15 = vld [vmem:[%s5585_s19 + $0x184] ss:$8 sps:$4 sm:$0xff]  }
  0x3b   : >> { %738 = vmatpush1.bf16.msra.mxu0 %v4173_v22  ;;  %v4231_v16 = vld [vmem:[%s5585_s19 + $0x180] ss:$8 sps:$4 sm:$0xff]   ;;  %v4236_v17 = vld [vmem:[%s5585_s19 + $0x194] ss:$8 sps:$4 sm:$0xff]   ;;  %v4234_v18 = vld [vmem:[%s5585_s19 + $0x190] ss:$8 sps:$4 sm:$0xff]  }
  0x3c   : >> { %739 = vmatprep.subr.bf16.mxu0 %v4174_v26  ;;  %v4239_v19 = vld [vmem:[%s5585_s19 + $0x1a4] ss:$8 sps:$4 sm:$0xff]   ;;  %v4237_v20 = vld [vmem:[%s5585_s19 + $0x1a0] ss:$8 sps:$4 sm:$0xff]   ;;  %v4242_v21 = vld [vmem:[%s5585_s19 + $0x1b4] ss:$8 sps:$4 sm:$0xff]  }
  0x3d   : >> { %v4240_v22 = vld [vmem:[%s5585_s19 + $0x1b0] ss:$8 sps:$4 sm:$0xff]   ;;  %v4245_v23 = vld [vmem:[%s5585_s19 + $0x1c4] ss:$8 sps:$4 sm:$0xff]   ;;  %v4243_v24 = vld [vmem:[%s5585_s19 + $0x1c0] ss:$8 sps:$4 sm:$0xff]  }
  0x3e   : >> { %v4248_v25 = vld [vmem:[%s5585_s19 + $0x1d4] ss:$8 sps:$4 sm:$0xff]   ;;  %v4246_v26 = vld [vmem:[%s5585_s19 + $0x1d0] ss:$8 sps:$4 sm:$0xff]   ;;  %v4250_v63 = vld [vmem:[%s5544_s4] sm:$0x7f]  }
  0x3f   : >> { %740 = vmatpush1.bf16.msra.mxu0 %v4176_v31  ;;  %v1337_v31 = vld [vmem:[%s5586_s25] sm:$0x3]  ;;  %vm2755_vm0 = vcmask 650243   ;;  %s2742_s21 = scalar_lea.vmem [#allocation2], %s4487_s26  ;;  %s612_s26 = sadd.s32 1, %s4487_s26  }
  0x40   : >> { %846 = vmatprep.subr.bf16.mxu0 %v4179_v35  ;;  %p609_p11 = scmp.ge.s32.totalorder %s612_s26, 8  }
  0x41   : > { %vm4491_vm2 = vmmov (%p609_p11), 0   ;;  %vm3275_vm4 = vcmask (%p609_p11), 982016   ;;  %s5588_s18 = sld [smem:[#allocation16_spill]] (%p609_p11)  ;;  %s3905_s27 = sshll.u32 (%p609_p11), %s4614_s1, 7 }
  0x42   : >> { %3547 = vmatmul.mubr.msk.bf16.vlgmr.msra.gmra.mrb[0].mxu0 %vm722_vm3, %v658_v38  ;;  %s5589_s28 = scalar_lea.vmem (%p609_p11), [#allocation3], %s4645_s29  ;;  %s5590_s20 = sld [smem:[#allocation17_spill]] (%p609_p11) }
  0x43   : >> { %847 = vmatpush1.bf16.msra.mxu0 %v4177_v37  ;;  %771 = vmatprep.mubr.bf16.mxu0 %v4489_v2  ;;  %s3439_s25 = sshll.u32 (%p609_p11), %s5589_s28, 4  ;;  %s5592_s2 = smov (%p609_p11), %s5589_s28  ;;  %s5496_s25 = int_to_ptr.vmem [resolvable:$true] %s3439_s25 }
  0x44   : >> { %848 = vmatprep.subr.bf16.mxu0 %v4182_v39  ;;  %s5593_s1 = sand.u32 (%p609_p11), 1, %s4475_s30  }
  0x45   : > { %s3426_s0 = scalar_lea.sflag (%p609_p11), [#allocation4], %s5593_s1 }
  0x47   : >> { %849 = vmatpush1.bf16.msra.mxu0 %v4180_v40 }
  0x48   : >> { %850 = vmatprep.subr.bf16.mxu0 %v4185_v41  ;;  %s5591_s26 = smov (%p609_p11), %s5590_s20 }
  0x4a   : >> { %3548 = vmatmul.mubr.msk.bf16.gmra.mrb[4].mxu0 %vm722_vm3, %v661_v42 }
  0x4b   : >> { %851 = vmatpush1.bf16.msra.mxu0 %v4183_v43  ;;  %878 = vmatprep.mubr.bf16.mxu0 %v4489_v2 }
  0x4c   : >> { %852 = vmatprep.subr.bf16.mxu0 %v4188_v44 }
  0x4f   : >> { %853 = vmatpush1.bf16.msra.mxu0 %v4186_v45 }
  0x50   : >> { %854 = vmatprep.subr.bf16.mxu0 %v4191_v46 }
  0x53   : >> { %855 = vmatpush1.bf16.msra.mxu0 %v4189_v47 }
  0x54   : >> { %856 = vmatprep.subr.bf16.mxu0 %v4194_v48 }
  0x57   : >> { %857 = vmatpush1.bf16.msra.mxu0 %v4192_v49 }
  0x58   : >> { %984 = vmatprep.subr.bf16.mxu0 %v4197_v50 }
  0x5a   : >> { %3561 = vmatmul.mubr.msk.bf16.vlgmr.msra.gmra.mrb[0].mxu0 %vm722_vm3, %v4683_v12  ;;  %v4230_v12 = vld [vmem:[%s5585_s19 + $0x174] ss:$8 sps:$4 sm:$0xff]  }
  0x5b   : >> { %985 = vmatpush1.bf16.msra.mxu0 %v4195_v51  ;;  %888 = vmatprep.mubr.bf16.mxu0 %v4489_v2 }
  0x5c   : >> { %986 = vmatprep.subr.bf16.mxu0 %v4200_v52 }
  0x5f   : >> { %987 = vmatpush1.bf16.msra.mxu0 %v4198_v53 }
  0x60   : >> { %988 = vmatprep.subr.bf16.mxu0 %v4203_v54 }
  0x62   : >> { %3562 = vmatmul.mubr.msk.bf16.gmra.mrb[4].mxu0 %vm722_vm3, %v4688_v14 }
  0x63   : >> { %989 = vmatpush1.bf16.msra.mxu0 %v4201_v55  ;;  %1016 = vmatprep.mubr.bf16.mxu0 %v4489_v2 }
  0x64   : >> { %990 = vmatprep.subr.bf16.mxu0 %v4206_v56 }
  0x67   : >> { %991 = vmatpush1.bf16.msra.mxu0 %v4204_v57 }
  0x68   : >> { %992 = vmatprep.subr.bf16.mxu0 %v4209_v58 }
  0x6b   : >> { %993 = vmatpush1.bf16.msra.mxu0 %v4207_v59 }
  0x6c   : >> { %994 = vmatprep.subr.bf16.mxu0 %v4212_v60 }
  0x6f   : >> { %995 = vmatpush1.bf16.msra.mxu0 %v4210_v61 }
  0x70   : >> { %1132 = vmatprep.subr.bf16.mxu0 %v4215_v62  ;;  %v4249_v62 = vld [vmem:[%s5587_s24] sm:$0x7f]   ;;  %s5494_s24 = scalar_lea.hbm (%p609_p11), %s5590_s20, %s3905_s27 }
  0x72   : >> { %3587 = vmatmul.mubr.msk.bf16.vlgmr.msra.gmra.mrb[0].mxu0 %vm722_vm3, %v917_v4  ;;  %v4254_v4 = vld [vmem:[%s5545_s5 + $0x18] sm:$0xff]  }
  0x73   : >> { %1133 = vmatpush1.bf16.msra.mxu0 %v4213_v1  ;;  %1026 = vmatprep.mubr.bf16.mxu0 %v4489_v2  ;;  %v4252_v1 = vld [vmem:[%s5545_s5 + $0x8] sm:$0xff]  }
  0x74   : >> { %1134 = vmatprep.subr.bf16.mxu0 %v4218_v3  ;;  %v4253_v3 = vld [vmem:[%s5545_s5 + $0x10] sm:$0xff]  }
  0x77   : >> { %1135 = vmatpush1.bf16.msra.mxu0 %v4216_v5  ;;  %v4255_v5 = vld [vmem:[%s5545_s5 + $0x20] sm:$0xff]  }
  0x78   : >> { %1136 = vmatprep.subr.bf16.mxu0 %v4221_v6  ;;  %v4256_v6 = vld [vmem:[%s5545_s5 + $0x28] sm:$0xff]  }
  0x7a   : >> { %3588 = vmatmul.mubr.msk.bf16.gmra.mrb[4].mxu0 %vm722_vm3, %v916_v0  ;;  %v4251_v0 = vld [vmem:[%s5545_s5] sm:$0xff]  }
  0x7b   : >> { %1137 = vmatpush1.bf16.msra.mxu0 %v4219_v7  ;;  %1164 = vmatprep.mubr.bf16.mxu0 %v4489_v2  ;;  %v4257_v7 = vld [vmem:[%s5545_s5 + $0x30] sm:$0xff]  }
  0x7c   : >> { %1138 = vmatprep.subr.bf16.mxu0 %v4224_v8  ;;  %v4258_v8 = vld [vmem:[%s5545_s5 + $0x38] sm:$0xff]  }
  0x7f   : >> { %1139 = vmatpush1.bf16.msra.mxu0 %v4222_v9  ;;  %v4259_v9 = vld [vmem:[%s5545_s5 + $0x40] sm:$0xff]  }
  0x80   : >> { %1140 = vmatprep.subr.bf16.mxu0 %v4227_v10  ;;  %v4260_v10 = vld [vmem:[%s5545_s5 + $0x48] sm:$0xff]  }
  0x83   : >> { %1141 = vmatpush1.bf16.msra.mxu0 %v4225_v11  ;;  %v4261_v11 = vld [vmem:[%s5545_s5 + $0x50] ss:$0 sps:$4 sm:$0xff]  }
  0x84   : >> { %1142 = vmatprep.subr.bf16.mxu0 %v4230_v12  ;;  %v1579_v12 = vsel %vm1577_vm6, %v4261_v11, 0 }
  0x87   : >> { %1143 = vmatpush1.bf16.msra.mxu0 %v4228_v13 }
  0x88   : >> { %1276 = vmatprep.subr.bf16.mxu0 %v4233_v15 }
  0x8a   : >> { %3613 = vmatmul.mubr.msk.bf16.vlgmr.msra.gmra.mrb[0].mxu0 %vm722_vm3, %v4711_v34 }
  0x8b   : >> { %1277 = vmatpush1.bf16.msra.mxu0 %v4231_v16  ;;  %1174 = vmatprep.mubr.bf16.mxu0 %v4489_v2 }
  0x8c   : >> { %1278 = vmatprep.subr.bf16.mxu0 %v4236_v17 }
  0x8f   : >> { %1279 = vmatpush1.bf16.msra.mxu0 %v4234_v18 }
  0x90   : >> { %1280 = vmatprep.subr.bf16.mxu0 %v4239_v19 }
  0x92   : >> { %3614 = vmatmul.mubr.msk.bf16.gmra.mrb[4].mxu0 %vm722_vm3, %v4703_v28  ;;  %v4891_v28 = vshrl.u32 %v1339_v27, 7 }
  0x93   : >> { %1281 = vmatpush1.bf16.msra.mxu0 %v4237_v20  ;;  %1308 = vmatprep.mubr.bf16.mxu0 %v4489_v2 }
  0x94   : >> { %1282 = vmatprep.subr.bf16.mxu0 %v4242_v21  ;;  %v1341_v29 = vsub.s32 0, %v4891_v28  ;;  %v1345_v32 = vsub.s32 1, %v4891_v28  ;;  %v2393_v28 = vld [vmem:[%s5549_s9] sm:$0x7] }
  0x96   : >> { %v1342_v33 = vrot.slane %v1337_v31, %v1341_v29  ;;  %v1346_v14 = vrot.slane %v1337_v31, %v1345_v32  ;;  %v4262_v31 = vld [vmem:[%s5546_s6] sm:$0xff]  }
  0x97   : >> { %1283 = vmatpush1.bf16.msra.mxu0 %v4240_v22 }
  0x98   : >> { %1284 = vmatprep.subr.bf16.mxu0 %v4245_v23 }
  0x9b   : >> { %1285 = vmatpush1.bf16.msra.mxu0 %v4243_v24 }
  0x9c   : >> { %1286 = vmatprep.subr.bf16.mxu0 %v4248_v25 }
  0x9f   : >> { %1287 = vmatpush1.bf16.msra.mxu0 %v4246_v26 }
  0xa2   : >> { %3639 = vmatmul.mubr.msk.bf16.vlgmr.msra.gmra.mrb[0].mxu0 %vm722_vm3, %v4719_v36 }
  0xa3   : >> { %1318 = vmatprep.mubr.bf16.mxu0 %v4489_v2 }
  0xaa   : >> { %3640 = vmatmul.mubr.msk.bf16.gmra.mrb[4].mxu0 %vm722_vm3, %v1208_v30  ;;  %vm2817_vm3 = vcmask (%p609_p11), 654336  }
  0xab   : >> { %2439 = vmatprep.mubr.bf16.mxu0 %v4489_v2 }
 0x175   : >> { %v1310_v30 = vpop.f32.mrb[0].mxu0 }
 0x176   : >> { %v1349_v34 = vadd.f32 %v1342_v33, %v1310_v30  ;;  %v1312_v35 = vpop.f32.mrb[1].mxu0  ;;  %v4265_v30 = vld [vmem:[%s5546_s6 + $0x18] sm:$0xff]  }
 0x177   : >> { %v1350_v36 = vadd.f32 %v1346_v14, %v1312_v35  ;;  %v1314_v37 = vpop.f32.mrb[2].mxu0  ;;  %v4267_v35 = vld [vmem:[%s5546_s6 + $0x28] sm:$0xff]  }
 0x178   : >> { %v1351_v38 = vadd.f32 %v1342_v33, %v1314_v37  ;;  %v1316_v39 = vpop.f32.mrb[3].mxu0  ;;  %v1357_v41 = vmax.f32 %v1349_v34, 0.0  ;;  %v4266_v34 = vld [vmem:[%s5546_s6 + $0x20] sm:$0xff]   ;;  %v4269_v37 = vld [vmem:[%s5546_s6 + $0x38] sm:$0xff]  }
 0x179   : >> { %v1352_v40 = vadd.f32 %v1346_v14, %v1316_v39  ;;  %v1358_v43 = vmax.f32 %v1350_v36, 0.0  ;;  %v4268_v36 = vld [vmem:[%s5546_s6 + $0x30] sm:$0xff]   ;;  %v4271_v39 = vld [vmem:[%s5546_s6 + $0x48] sm:$0xff]  }
 0x17a   : >> { %v1359_v42 = vmax.f32 %v1351_v38, 0.0  ;;  %v4270_v38 = vld [vmem:[%s5546_s6 + $0x40] sm:$0xff]  }
 0x17b   : >> { %v1360_v44 = vmax.f32 %v1352_v40, 0.0  ;;  %v4272_v40 = vld [vmem:[%s5546_s6 + $0x50] ss:$0 sps:$4 sm:$0xff]  }
 0x17c   : >> { %v1367_v45 = vpack.c.bf16 %v1359_v42, %v1357_v41  ;;  %v1707_v41 = vsel %vm1577_vm6, %v4272_v40, 0  ;;  %v4273_v42 = vld [vmem:[%s5547_s7 + $0x58] ss:$8 sps:$4 sm:$0xff]  }
 0x17d   : >> { %v1320_v46 = vpop.f32.mrb[4].mxu0  ;;  %v1368_v47 = vpack.c.bf16 %v1360_v44, %v1358_v43  ;;  %v4275_v43 = vld [vmem:[%s5547_s7 + $0x5c] ss:$8 sps:$4 sm:$0xff]   ;;  %v4278_v44 = vld [vmem:[%s5547_s7 + $0x6c] ss:$8 sps:$4 sm:$0xff]  }
 0x17e   : >> { %v1353_v48 = vadd.f32 %v1342_v33, %v1320_v46  ;;  %v1322_v49 = vpop.f32.mrb[5].mxu0  ;;  %v4281_v46 = vld [vmem:[%s5547_s7 + $0x7c] ss:$8 sps:$4 sm:$0xff]  }
 0x17f   : >> { %v1354_v50 = vadd.f32 %v1346_v14, %v1322_v49  ;;  %v1324_v51 = vpop.f32.mrb[6].mxu0  ;;  %1387 = vmatprep.subr.bf16.mxu1 %v1368_v47  ;;  %v4282_v49 = vld [vmem:[%s5547_s7 + $0x88] ss:$8 sps:$4 sm:$0xff]  }
 0x180   : >> { %v1355_v52 = vadd.f32 %v1342_v33, %v1324_v51  ;;  %v1326_v53 = vpop.f32.mrb[7].mxu0  ;;  %1388 = vmatpush1.bf16.msra.mxu1 %v1367_v45  ;;  %v1361_v55 = vmax.f32 %v1353_v48, 0.0  ;;  %v4263_v33 = vld [vmem:[%s5546_s6 + $0x8] sm:$0xff]   ;;  %v4285_v51 = vld [vmem:[%s5547_s7 + $0x98] ss:$8 sps:$4 sm:$0xff]  }
 0x181   : >> { %v1356_v54 = vadd.f32 %v1346_v14, %v1326_v53  ;;  %v1362_v57 = vmax.f32 %v1354_v50, 0.0  ;;  %v4264_v14 = vld [vmem:[%s5546_s6 + $0x10] sm:$0xff]   ;;  %v4287_v50 = vld [vmem:[%s5547_s7 + $0x9c] ss:$8 sps:$4 sm:$0xff]  }
 0x182   : >> { %v1363_v56 = vmax.f32 %v1355_v52, 0.0  ;;  %v4284_v48 = vld [vmem:[%s5547_s7 + $0x8c] ss:$8 sps:$4 sm:$0xff]  }
 0x183   : >> { %v1364_v58 = vmax.f32 %v1356_v54, 0.0  ;;  %v3681_v52 = vld [vmem:[%s5547_s7 + $0xa8] sm:$0x33] }
 0x184   : >> { %v1369_v59 = vpack.c.bf16 %v1363_v56, %v1361_v55  ;;  %v3693_v53 = vcombine.high %v3681_v52, %v3681_v52  ;;  %v3692_v54 = vcombine.low %v3681_v52, %v3681_v52  ;;  %v4292_v55 = vld [vmem:[%s5547_s7 + $0x4] ss:$8 sps:$4 sm:$0xff]   ;;  %v3745_v52 = vld [vmem:[%s5547_s7 + $0x158] sm:$0x33] }
 0x185   : >> { %v1370_v60 = vpack.c.bf16 %v1364_v58, %v1362_v57 }
 0x186   : >> { %v1382_v61 = vsel %vm1206_vm1, %v1369_v59, 0  ;;  %v1844_v56 = vsel %vm1842_vm8, %v3692_v54, 0  ;;  %v3757_v54 = vcombine.high %v3745_v52, %v3745_v52 }
 0x187   : >> { %3642 = vmatprep.subr.msk.bf16.mxu1 %vm1206_vm1, %v1370_v60 }
 0x188   : >> { %1390 = vmatpush1.bf16.msra.mxu1 %v1382_v61 }
 0x189   : >> { %1440 = vmatprep.subr.bf16.mxu1 %v1368_v47  ;;  %v4279_v47 = vld [vmem:[%s5547_s7 + $0x78] ss:$8 sps:$4 sm:$0xff]  }
 0x18b   : >> { %3643 = vmatmul.mubr.msk.bf16.vlgmr.msra.gmra.mrb[0].mxu1 %vm1376_vm5, %v4249_v62 }
 0x18c   : >> { %1441 = vmatpush1.bf16.msra.mxu1 %v1367_v45  ;;  %1472 = vmatprep.mubr.bf16.mxu1 %v4489_v2  ;;  %v4276_v45 = vld [vmem:[%s5547_s7 + $0x68] ss:$8 sps:$4 sm:$0xff]  }
 0x18d   : >> { %3645 = vmatprep.subr.msk.bf16.mxu1 %vm1206_vm1, %v1370_v60  ;;  %vm2759_vm1 = vcmask 651268  }
 0x190   : >> { %1443 = vmatpush1.bf16.msra.mxu1 %v1382_v61 }
 0x191   : >> { %1581 = vmatprep.subr.bf16.mxu1 %v4489_v2 }
 0x193   : >> { %3646 = vmatmul.mubr.msk.bf16.vlgmr.msra.gmra.mrb[4].mxu1 %vm1376_vm5, %v4250_v63 }
 0x194   : >> { %1582 = vmatpush1.bf16.msra.mxu1 %v4251_v0 }
 0x195   : >> { %1583 = vmatprep.subr.bf16.mxu1 %v4489_v2 }
 0x198   : >> { %1584 = vmatpush1.bf16.msra.mxu1 %v4252_v1 }
 0x199   : >> { %1585 = vmatprep.subr.bf16.mxu1 %v4489_v2 }
 0x19c   : >> { %1586 = vmatpush1.bf16.msra.mxu1 %v4253_v3 }
 0x19d   : >> { %1587 = vmatprep.subr.bf16.mxu1 %v4489_v2 }
 0x1a0   : >> { %1588 = vmatpush1.bf16.msra.mxu1 %v4254_v4 }
 0x1a1   : >> { %1589 = vmatprep.subr.bf16.mxu1 %v4489_v2 }
 0x1a4   : >> { %1590 = vmatpush1.bf16.msra.mxu1 %v4255_v5 }
 0x1a5   : >> { %1591 = vmatprep.subr.bf16.mxu1 %v4489_v2 }
 0x1a8   : >> { %1592 = vmatpush1.bf16.msra.mxu1 %v4256_v6 }
 0x1a9   : >> { %1593 = vmatprep.subr.bf16.mxu1 %v4489_v2 }
 0x1ac   : >> { %1594 = vmatpush1.bf16.msra.mxu1 %v4257_v7 }
 0x1ad   : >> { %1595 = vmatprep.subr.bf16.mxu1 %v4489_v2 }
 0x1b0   : >> { %1596 = vmatpush1.bf16.msra.mxu1 %v4258_v8 }
 0x1b1   : >> { %1597 = vmatprep.subr.bf16.mxu1 %v4489_v2 }
 0x1b4   : >> { %1598 = vmatpush1.bf16.msra.mxu1 %v4259_v9 }
 0x1b5   : >> { %1599 = vmatprep.subr.bf16.mxu1 %v4489_v2 }
 0x1b8   : >> { %1600 = vmatpush1.bf16.msra.mxu1 %v4260_v10  ;;  %v4290_v10 = vld [vmem:[%s5547_s7] ss:$8 sps:$4 sm:$0xff]  }
 0x1b9   : >> { %1601 = vmatprep.subr.bf16.mxu1 %v4489_v2 }
 0x1bc   : >> { %1602 = vmatpush1.bf16.msra.mxu1 %v1579_v12  ;;  %v4295_v12 = vld [vmem:[%s5547_s7 + $0x14] ss:$8 sps:$4 sm:$0xff]  }
 0x1bd   : >> { %1709 = vmatprep.subr.bf16.mxu1 %v4489_v2 }
 0x25e   : >> { %v1421_v13 = vpop.f32.mrb[0].mxu1 }
 0x25f   : >> { %v1423_v15 = vpop.f32.mrb[1].mxu1 }
 0x260   : >> { %v1425_v16 = vpop.f32.mrb[2].mxu1 }
 0x261   : >> { %v1427_v17 = vpop.f32.mrb[3].mxu1 }
 0x266   : >> { %v1474_v18 = vpop.f32.mrb[4].mxu1 }
 0x267   : >> { %v1483_v19 = vmax.f32 %v1421_v13, %v1474_v18  ;;  %v1476_v20 = vpop.f32.mrb[5].mxu1  ;;  %v4301_v18 = vld [vmem:[%s5547_s7 + $0x34] ss:$8 sps:$4 sm:$0xff]  }
 0x268   : >> { %v1484_v21 = vmax.f32 %v1423_v15, %v1476_v20  ;;  %v1478_v22 = vpop.f32.mrb[6].mxu1  ;;  %v4293_v15 = vld [vmem:[%s5547_s7 + $0x10] ss:$8 sps:$4 sm:$0xff]   ;;  %v4304_v20 = vld [vmem:[%s5547_s7 + $0x44] ss:$8 sps:$4 sm:$0xff]  }
 0x269   : >> { %v1485_v23 = vmax.f32 %v1425_v16, %v1478_v22  ;;  %v1480_v24 = vpop.f32.mrb[7].mxu1  ;;  %v4298_v16 = vld [vmem:[%s5547_s7 + $0x24] ss:$8 sps:$4 sm:$0xff]   ;;  %v4302_v22 = vld [vmem:[%s5547_s7 + $0x40] ss:$8 sps:$4 sm:$0xff]  }
 0x26a   : >> { %v1486_v25 = vmax.f32 %v1427_v17, %v1480_v24  ;;  %v4296_v17 = vld [vmem:[%s5547_s7 + $0x20] ss:$8 sps:$4 sm:$0xff]  }
 0x26b   : >> { %v1508_v26 = vpack.c.bf16 %v1485_v23, %v1483_v19  ;;  %v4299_v19 = vld [vmem:[%s5547_s7 + $0x30] ss:$8 sps:$4 sm:$0xff]  }
 0x26c   : >> { %v1509_v27 = vpack.c.bf16 %v1486_v25, %v1484_v21  ;;  %v1762_v21 = vld [vmem:[%s5547_s7 + $0x50] sm:$0x33] }
 0x26d   : >> { %v3707_v23 = vcombine.high %v1762_v21, %v1762_v21  ;;  %v3706_v24 = vcombine.low %v1762_v21, %v1762_v21 }
 0x26e   : >> { %3658 = vmatprep.mubr.msk.bf16.mxu1 %vm1573_vm7, %v1509_v27 }
 0x26f   : >> { %1614 = vmatmul.mubr.bf16.vlgmr.msra.gmra.mrb[8].mxu1 %v1508_v26  ;;  %v1950_v25 = vsel %vm1842_vm8, %v3706_v24, 0 }
 0x270   : >> { %1710 = vmatpush1.bf16.msra.mxu1 %v4262_v31  ;;  %3670 = vmatprep.mubr.msk.bf16.mxu1 %vm1573_vm7, %v1509_v27  ;;  %v4307_v27 = vld [vmem:[%s5547_s7 + $0xb0] ss:$8 sps:$4 sm:$0xff]   ;;  %v4312_v31 = vld [vmem:[%s5547_s7 + $0xc4] ss:$8 sps:$4 sm:$0xff]  }
 0x271   : >> { %1711 = vmatprep.subr.bf16.mxu1 %v4489_v2 }
 0x274   : >> { %1712 = vmatpush1.bf16.msra.mxu1 %v4263_v33  ;;  %v4310_v33 = vld [vmem:[%s5547_s7 + $0xc0] ss:$8 sps:$4 sm:$0xff]  }
 0x275   : >> { %1713 = vmatprep.subr.bf16.mxu1 %v4489_v2 }
 0x278   : >> { %1714 = vmatpush1.bf16.msra.mxu1 %v4264_v14  ;;  %v4315_v14 = vld [vmem:[%s5547_s7 + $0xd4] ss:$8 sps:$4 sm:$0xff]  }
 0x279   : >> { %1715 = vmatprep.subr.bf16.mxu1 %v4489_v2 }
 0x27c   : >> { %1716 = vmatpush1.bf16.msra.mxu1 %v4265_v30  ;;  %v4313_v30 = vld [vmem:[%s5547_s7 + $0xd0] ss:$8 sps:$4 sm:$0xff]  }
 0x27d   : >> { %1717 = vmatprep.subr.bf16.mxu1 %v4489_v2 }
 0x280   : >> { %1718 = vmatpush1.bf16.msra.mxu1 %v4266_v34  ;;  %v4318_v34 = vld [vmem:[%s5547_s7 + $0xe4] ss:$8 sps:$4 sm:$0xff]  }
 0x281   : >> { %1719 = vmatprep.subr.bf16.mxu1 %v4489_v2 }
 0x284   : >> { %1720 = vmatpush1.bf16.msra.mxu1 %v4267_v35  ;;  %v4316_v35 = vld [vmem:[%s5547_s7 + $0xe0] ss:$8 sps:$4 sm:$0xff]  }
 0x285   : >> { %1721 = vmatprep.subr.bf16.mxu1 %v4489_v2 }
 0x288   : >> { %1722 = vmatpush1.bf16.msra.mxu1 %v4268_v36  ;;  %v4321_v36 = vld [vmem:[%s5547_s7 + $0xf4] ss:$8 sps:$4 sm:$0xff]  }
 0x289   : >> { %1723 = vmatprep.subr.bf16.mxu1 %v4489_v2 }
 0x28c   : >> { %1724 = vmatpush1.bf16.msra.mxu1 %v4269_v37  ;;  %v3720_v37 = vld [vmem:[%s5547_s7 + $0x100] sm:$0x33] }
 0x28d   : >> { %1725 = vmatprep.subr.bf16.mxu1 %v4489_v2  ;;  %v3731_v40 = vcombine.low %v3720_v37, %v3720_v37 }
 0x290   : >> { %1726 = vmatpush1.bf16.msra.mxu1 %v4270_v38  ;;  %v4319_v38 = vld [vmem:[%s5547_s7 + $0xf0] ss:$8 sps:$4 sm:$0xff]  }
 0x291   : >> { %1727 = vmatprep.subr.bf16.mxu1 %v4489_v2 }
 0x294   : >> { %1728 = vmatpush1.bf16.msra.mxu1 %v4271_v39  ;;  %v3732_v39 = vcombine.high %v3720_v37, %v3720_v37  ;;  %v4366_v37 = vld [vmem:[%s5551_s11 + $0x40] sm:$0xff]  }
 0x295   : >> { %1729 = vmatprep.subr.bf16.mxu1 %v4489_v2 }
 0x298   : >> { %1730 = vmatpush1.bf16.msra.mxu1 %v1707_v41  ;;  %v2071_v41 = vsel %vm1842_vm8, %v3731_v40, 0 }
 0x299   : >> { %1849 = vmatprep.subr.bf16.mxu1 %v4275_v43  ;;  %v4324_v43 = vld [vmem:[%s5547_s7 + $0x108] ss:$8 sps:$4 sm:$0xff]  }
 0x29b   : >> { %1742 = vmatmul.mubr.bf16.vlgmr.msra.gmra.mrb[12].mxu1 %v1508_v26  ;;  %v4309_v26 = vld [vmem:[%s5547_s7 + $0xb4] ss:$8 sps:$4 sm:$0xff]  }
 0x29c   : >> { %1881 = vmatprep.mubr.bf16.mxu1 %v4489_v2  ;;  %1850 = vmatpush1.bf16.msra.mxu1 %v4273_v42  ;;  %v4326_v42 = vld [vmem:[%s5547_s7 + $0x10c] ss:$8 sps:$4 sm:$0xff]  }
 0x29d   : >> { %1851 = vmatprep.subr.bf16.mxu1 %v4278_v44 }
 0x2a0   : >> { %1852 = vmatpush1.bf16.msra.mxu1 %v4276_v45  ;;  %v4329_v45 = vld [vmem:[%s5547_s7 + $0x11c] ss:$8 sps:$4 sm:$0xff]  }
 0x2a1   : >> { %1853 = vmatprep.subr.bf16.mxu1 %v4281_v46  ;;  %v4327_v46 = vld [vmem:[%s5547_s7 + $0x118] ss:$8 sps:$4 sm:$0xff]  }
 0x2a4   : >> { %1854 = vmatpush1.bf16.msra.mxu1 %v4279_v47  ;;  %v4332_v47 = vld [vmem:[%s5547_s7 + $0x12c] ss:$8 sps:$4 sm:$0xff]  }
 0x2a5   : >> { %1855 = vmatprep.subr.bf16.mxu1 %v4284_v48  ;;  %v4330_v48 = vld [vmem:[%s5547_s7 + $0x128] ss:$8 sps:$4 sm:$0xff]  }
 0x2a8   : >> { %1856 = vmatpush1.bf16.msra.mxu1 %v4282_v49  ;;  %v4335_v49 = vld [vmem:[%s5547_s7 + $0x13c] ss:$8 sps:$4 sm:$0xff]  }
 0x2a9   : >> { %1857 = vmatprep.subr.bf16.mxu1 %v4287_v50  ;;  %v4333_v50 = vld [vmem:[%s5547_s7 + $0x138] ss:$8 sps:$4 sm:$0xff]  }
 0x2ac   : >> { %1858 = vmatpush1.bf16.msra.mxu1 %v4285_v51  ;;  %v4338_v51 = vld [vmem:[%s5547_s7 + $0x14c] ss:$8 sps:$4 sm:$0xff]  }
 0x2ad   : >> { %3694 = vmatprep.subr.msk.bf16.mxu1 %vm1842_vm8, %v3693_v53  ;;  %v4336_v53 = vld [vmem:[%s5547_s7 + $0x148] ss:$8 sps:$4 sm:$0xff]  }
 0x2b0   : >> { %1860 = vmatpush1.bf16.msra.mxu1 %v1844_v56 }
 0x2b1   : >> { %1955 = vmatprep.subr.bf16.mxu1 %v4292_v55  ;;  %v3756_v55 = vcombine.low %v3745_v52, %v3745_v52  ;;  %v4369_v52 = vld [vmem:[%s5552_s12 + $0x8] sm:$0xff]  }
 0x2b3   : >> { %v2197_v56 = vsel %vm1842_vm8, %v3756_v55, 0  ;;  %v4372_v55 = vld [vmem:[%s5552_s12 + $0x20] sm:$0xff]  }
 0x342   : >> { %v1615_v57 = vpop.f32.mrb[8].mxu1 }
 0x343   : >> { %v1617_v58 = vpop.f32.mrb[9].mxu1 }
 0x344   : >> { %v1618_v59 = vpop.f32.mrb[10].mxu1  ;;  %v4341_v58 = vld [vmem:[%s5547_s7 + $0x160] ss:$8 sps:$4 sm:$0xff]  }
 0x345   : >> { %v1620_v60 = vpop.f32.mrb[11].mxu1 }
 0x346   : >> { %v4344_v60 = vld [vmem:[%s5547_s7 + $0x170] ss:$8 sps:$4 sm:$0xff]  }
 0x36e   : >> { %v1743_v61 = vpop.f32.mrb[12].mxu1 }
 0x36f   : >> { %v1750_v62 = vmax.f32 %v1615_v57, %v1743_v61  ;;  %v1745_v63 = vpop.f32.mrb[13].mxu1  ;;  %v4343_v57 = vld [vmem:[%s5547_s7 + $0x164] ss:$8 sps:$4 sm:$0xff]  }
 0x370   : >> { %v1746_v0 = vpop.f32.mrb[14].mxu1  ;;  %v4349_v61 = vld [vmem:[%s5547_s7 + $0x184] ss:$8 sps:$4 sm:$0xff]   ;;  %v4352_v63 = vld [vmem:[%s5547_s7 + $0x194] ss:$8 sps:$4 sm:$0xff]  }
 0x371   : >> { %v1751_v1 = vmax.f32 %v1618_v59, %v1746_v0  ;;  %v1748_v3 = vpop.f32.mrb[15].mxu1  ;;  %v4346_v59 = vld [vmem:[%s5547_s7 + $0x174] ss:$8 sps:$4 sm:$0xff]   ;;  %v4350_v0 = vld [vmem:[%s5547_s7 + $0x190] ss:$8 sps:$4 sm:$0xff]  }
 0x372   : >> { %v3770_v3 = vld [vmem:[%s5547_s7 + $0x1b0] sm:$0x33] }
 0x373   : >> { %v5041_v4 = vpack.c.bf16 %v1751_v1, %v1750_v62  ;;  %v4347_v62 = vld [vmem:[%s5547_s7 + $0x180] ss:$8 sps:$4 sm:$0xff]   ;;  %v4355_v1 = vld [vmem:[%s5547_s7 + $0x1a4] ss:$8 sps:$4 sm:$0xff]  }
 0x375   : >> { %v1779_v5 = vshll.u32 %v5041_v4, 16  ;;  %v1777_v6 = vshrl.u32 %v5041_v4, 16  ;;  %v2011_v44 = vrot.slane %v5041_v4, 1 }
 0x377   : >> { %v1781_v7 = vrot.slane %v1779_v5, 1  ;;  %v5045_v8 = vrot.slane %v1777_v6, 1  ;;  %v5047_v9 = vrot.slane %v1779_v5, 2  ;;  %v4353_v5 = vld [vmem:[%s5547_s7 + $0x1a0] ss:$8 sps:$4 sm:$0xff]  }
 0x379   : >> { %v1782_v11 = vor.u32 %v1781_v7, %v1777_v6  ;;  %v2137_v13 = vor.u32 %v5047_v9, %v5045_v8  ;;  %v3782_v6 = vcombine.high %v3770_v3, %v3770_v3  ;;  %v3781_v7 = vcombine.low %v3770_v3, %v3770_v3 }
 0x37a   : >> { %v2261_v9 = vrot.slane %v5041_v4, 2 }
 0x37b   : >> { %3695 = vmatmul.mubr.msk.bf16.vlgmr.msra.gmra.mrb[16].mxu1 %vm1838_vm9, %v1782_v11  ;;  %v2321_v8 = vsel %vm1842_vm8, %v3781_v7, 0  ;;  %v4378_v7 = vld [vmem:[%s5553_s13 + $0x28] sm:$0xff] (%p609_p11)  }
 0x37c   : >> { %1956 = vmatpush1.bf16.msra.mxu1 %v4290_v10  ;;  %1987 = vmatprep.mubr.bf16.mxu1 %v4489_v2  ;;  %v2373_v10 = vld [vmem:[%s5548_s8] sm:$0x3] }
 0x37d   : >> { %1957 = vmatprep.subr.bf16.mxu1 %v4295_v12  ;;  %v2378_v11 = vrot.slane %v2373_v10, %v1341_v29  ;;  %v2382_v12 = vrot.slane %v2373_v10, %v1345_v32  ;;  %v2448_v29 = vld [vmem:[%s5550_s10] sm:$0x7]  ;;  %v4380_v10 = vld [vmem:[%s5553_s13 + $0x30] sm:$0xff] (%p609_p11)  }
 0x37e   : >> { %v4358_v32 = vld [vmem:[%s5551_s11] sm:$0xff]  }
 0x380   : >> { %1958 = vmatpush1.bf16.msra.mxu1 %v4293_v15 }
 0x381   : >> { %1959 = vmatprep.subr.bf16.mxu1 %v4298_v16 }
 0x384   : >> { %1960 = vmatpush1.bf16.msra.mxu1 %v4296_v17 }
 0x385   : >> { %1961 = vmatprep.subr.bf16.mxu1 %v4301_v18 }
 0x388   : >> { %1962 = vmatpush1.bf16.msra.mxu1 %v4299_v19 }
 0x389   : >> { %1963 = vmatprep.subr.bf16.mxu1 %v4304_v20 }
 0x38c   : >> { %1964 = vmatpush1.bf16.msra.mxu1 %v4302_v22 }
 0x38d   : >> { %3708 = vmatprep.subr.msk.bf16.mxu1 %vm1842_vm8, %v3707_v23 }
 0x390   : >> { %1966 = vmatpush1.bf16.msra.mxu1 %v1950_v25 }
 0x391   : >> { %2076 = vmatprep.subr.bf16.mxu1 %v4309_v26 }
 0x393   : >> { %3709 = vmatmul.mubr.msk.bf16.vlgmr.msra.gmra.mrb[16].mxu1 %vm1838_vm9, %v5041_v4 }
 0x394   : >> { %2077 = vmatpush1.bf16.msra.mxu1 %v4307_v27  ;;  %2108 = vmatprep.mubr.bf16.mxu1 %v4489_v2 }
 0x395   : >> { %2078 = vmatprep.subr.bf16.mxu1 %v4312_v31  ;;  %v4359_v31 = vld [vmem:[%s5551_s11 + $0x8] sm:$0xff]  }
 0x398   : >> { %2079 = vmatpush1.bf16.msra.mxu1 %v4310_v33  ;;  %v4360_v33 = vld [vmem:[%s5551_s11 + $0x10] sm:$0xff]  }
 0x399   : >> { %2080 = vmatprep.subr.bf16.mxu1 %v4315_v14  ;;  %v4361_v14 = vld [vmem:[%s5551_s11 + $0x18] sm:$0xff]  }
 0x39c   : >> { %2081 = vmatpush1.bf16.msra.mxu1 %v4313_v30  ;;  %v4362_v30 = vld [vmem:[%s5551_s11 + $0x20] sm:$0xff]  }
 0x39d   : >> { %2082 = vmatprep.subr.bf16.mxu1 %v4318_v34  ;;  %v4363_v34 = vld [vmem:[%s5551_s11 + $0x28] sm:$0xff]  }
 0x3a0   : >> { %2083 = vmatpush1.bf16.msra.mxu1 %v4316_v35  ;;  %v4364_v35 = vld [vmem:[%s5551_s11 + $0x30] sm:$0xff]  }
 0x3a1   : >> { %2084 = vmatprep.subr.bf16.mxu1 %v4321_v36  ;;  %v4365_v36 = vld [vmem:[%s5551_s11 + $0x38] sm:$0xff]  }
 0x3a4   : >> { %2085 = vmatpush1.bf16.msra.mxu1 %v4319_v38  ;;  %v4367_v38 = vld [vmem:[%s5551_s11 + $0x48] sm:$0xff]  }
 0x3a5   : >> { %3733 = vmatprep.subr.msk.bf16.mxu1 %vm1842_vm8, %v3732_v39 }
 0x3a8   : >> { %2087 = vmatpush1.bf16.msra.mxu1 %v2071_v41 }
 0x3a9   : >> { %2202 = vmatprep.subr.bf16.mxu1 %v4326_v42 }
 0x3ab   : >> { %3734 = vmatmul.mubr.msk.bf16.vlgmr.msra.gmra.mrb[16].mxu1 %vm1838_vm9, %v2011_v44 }
 0x3ac   : >> { %2203 = vmatpush1.bf16.msra.mxu1 %v4324_v43  ;;  %2234 = vmatprep.mubr.bf16.mxu1 %v4489_v2 }
 0x3ad   : >> { %2204 = vmatprep.subr.bf16.mxu1 %v4329_v45 }
 0x3b0   : >> { %2205 = vmatpush1.bf16.msra.mxu1 %v4327_v46 }
 0x3b1   : >> { %2206 = vmatprep.subr.bf16.mxu1 %v4332_v47 }
 0x3b4   : >> { %2207 = vmatpush1.bf16.msra.mxu1 %v4330_v48 }
 0x3b5   : >> { %2208 = vmatprep.subr.bf16.mxu1 %v4335_v49 }
 0x3b8   : >> { %2209 = vmatpush1.bf16.msra.mxu1 %v4333_v50  ;;  %v4368_v50 = vld [vmem:[%s5552_s12] sm:$0xff]  }
 0x3b9   : >> { %2210 = vmatprep.subr.bf16.mxu1 %v4338_v51 }
 0x3bc   : >> { %2211 = vmatpush1.bf16.msra.mxu1 %v4336_v53  ;;  %v4370_v53 = vld [vmem:[%s5552_s12 + $0x10] sm:$0xff]  }
 0x3bd   : >> { %3758 = vmatprep.subr.msk.bf16.mxu1 %vm1842_vm8, %v3757_v54  ;;  %v4371_v54 = vld [vmem:[%s5552_s12 + $0x18] sm:$0xff]  }
 0x3c0   : >> { %2213 = vmatpush1.bf16.msra.mxu1 %v2197_v56  ;;  %v4373_v56 = vld [vmem:[%s5552_s12 + $0x28] sm:$0xff]  }
 0x3c1   : >> { %2326 = vmatprep.subr.bf16.mxu1 %v4343_v57  ;;  %v4374_v57 = vld [vmem:[%s5552_s12 + $0x30] sm:$0xff]  }
 0x3c3   : >> { %3759 = vmatmul.mubr.msk.bf16.vlgmr.msra.gmra.mrb[16].mxu1 %vm1838_vm9, %v2137_v13 }
 0x3c4   : >> { %2327 = vmatpush1.bf16.msra.mxu1 %v4341_v58  ;;  %2358 = vmatprep.mubr.bf16.mxu1 %v4489_v2  ;;  %v4375_v58 = vld [vmem:[%s5552_s12 + $0x38] sm:$0xff]  }
 0x3c5   : >> { %2328 = vmatprep.subr.bf16.mxu1 %v4346_v59  ;;  %v4376_v59 = vld [vmem:[%s5552_s12 + $0x40] sm:$0xff]  }
 0x3c8   : >> { %2329 = vmatpush1.bf16.msra.mxu1 %v4344_v60  ;;  %v4377_v60 = vld [vmem:[%s5552_s12 + $0x48] sm:$0xff]  }
 0x3c9   : >> { %2330 = vmatprep.subr.bf16.mxu1 %v4349_v61 }
 0x3cc   : >> { %2331 = vmatpush1.bf16.msra.mxu1 %v4347_v62 }
 0x3cd   : >> { %2332 = vmatprep.subr.bf16.mxu1 %v4352_v63 }
 0x3d0   : >> { %2333 = vmatpush1.bf16.msra.mxu1 %v4350_v0 }
 0x3d1   : >> { %2334 = vmatprep.subr.bf16.mxu1 %v4355_v1 }
 0x3d4   : >> { %2335 = vmatpush1.bf16.msra.mxu1 %v4353_v5 }
 0x3d5   : >> { %3783 = vmatprep.subr.msk.bf16.mxu1 %vm1842_vm8, %v3782_v6 }
 0x3d8   : >> { %2337 = vmatpush1.bf16.msra.mxu1 %v2321_v8  ;;  %v4490_v8 = vmov (%p609_p11), 0.0  }
 0x3d9   : > { %3969 = vmatprep.subr.bf16.mxu1 (%p609_p11), %v4490_v8 }
 0x3db   : >> { %3784 = vmatmul.mubr.msk.bf16.vlgmr.msra.gmra.mrb[16].mxu1 %vm1838_vm9, %v2261_v9  ;;  %v4379_v9 = vld [vmem:[%s5553_s13] sm:$0xff] (%p609_p11)  }
 0x3dc   : > { %3970 = vmatpush3.bf16.msra.mxu1 (%p609_p11), %v4379_v9  ;;  %3979 = vmatprep.mubr.msk.bf16.mxu1 (%p609_p11), %vm4491_vm2, %v4490_v8 }
 0x3dd   : > { %3971 = vmatprep.subr.bf16.mxu1 (%p609_p11), %v4490_v8 }
 0x4ae   : >> { %v2360_v13 = vpop.f32.mrb[16].mxu1 }
 0x4af   : >> { %v2385_v15 = vadd.f32 %v2378_v11, %v2360_v13  ;;  %v2362_v16 = vpop.f32.mrb[17].mxu1  ;;  %v4383_v13 = vld [vmem:[%s5553_s13 + $0x10] sm:$0xff] (%p609_p11)  }
 0x4b0   : >> { %v2386_v17 = vadd.f32 %v2382_v12, %v2362_v16  ;;  %v2364_v18 = vpop.f32.mrb[18].mxu1  ;;  %v4385_v16 = vld [vmem:[%s5553_s13 + $0x18] sm:$0xff] (%p609_p11)  }
 0x4b1   : >> { %v2387_v19 = vadd.f32 %v2378_v11, %v2364_v18  ;;  %v2366_v20 = vpop.f32.mrb[19].mxu1  ;;  %v2389_v21 = vmax.f32 %v2385_v15, 0.0  ;;  %v4381_v11 = vld [vmem:[%s5553_s13 + $0x8] sm:$0xff] (%p609_p11)   ;;  %v4384_v15 = vld [vmem:[%s5553_s13 + $0x40] sm:$0xff] (%p609_p11)  }
 0x4b2   : >> { %v2388_v4 = vadd.f32 %v2382_v12, %v2366_v20  ;;  %v2390_v23 = vmax.f32 %v2386_v17, 0.0  ;;  %v4382_v12 = vld [vmem:[%s5553_s13 + $0x38] sm:$0xff] (%p609_p11)   ;;  %3972 = vmatpush3.bf16.msra.mxu1 (%p609_p11), %v4381_v11  ;;  %v4386_v17 = vld [vmem:[%s5553_s13 + $0x48] sm:$0xff] (%p609_p11)   ;;  %v4387_v18 = vld [vmem:[%s5553_s13 + $0x20] sm:$0xff] (%p609_p11)  }
 0x4b3   : >> { %v2391_v22 = vmax.f32 %v2387_v19, 0.0  ;;  %3973 = vmatprep.subr.bf16.mxu1 (%p609_p11), %v4490_v8 }
 0x4b4   : >> { %v2392_v24 = vmax.f32 %v2388_v4, 0.0 }
 0x4b5   : >> { %v2394_v25 = vpack.c.bf16 %v2391_v22, %v2389_v21  ;;  %v4388_v22 = vld [vmem:[%s5553_s13 + $0x50] sm:$0xff] (%p609_p11)  }
 0x4b6   : >> { %v2395_v26 = vpack.c.bf16 %v2392_v24, %v2390_v23  ;;  %3974 = vmatpush3.bf16.msra.mxu1 (%p609_p11), %v4383_v13  ;;  %v4389_v23 = vld [vmem:[%s5553_s13 + $0x78] sm:$0xff] (%p609_p11)   ;;  %v3885_v13 = vld [vmem:[%s5554_s14] ss:$0 sm:$0xff] (%p609_p11) }
 0x4b7   : >> { %v2402_v27 = vsel %vm2400_vm10, %v2394_v25, 0  ;;  %3975 = vmatprep.subr.bf16.mxu1 (%p609_p11), %v4490_v8  ;;  %v4390_v24 = vld [vmem:[%s5553_s13 + $0x58] sm:$0xff] (%p609_p11)   ;;  %v4391_v25 = vld [vmem:[%s5553_s13 + $0x80] sm:$0xff] (%p609_p11)  }
 0x4b8   : >> { %3785 = vmatprep.subr.msk.bf16.mxu0 %vm2400_vm10, %v2395_v26 }
 0x4b9   : >> { %2408 = vmatpush1.bf16.msra.mxu0 %v2402_v27 }
 0x4ba   : >> { %3787 = vmatprep.subr.msk.bf16.mxu0 %vm2400_vm10, %v2395_v26  ;;  %3976 = vmatpush3.bf16.msra.mxu1 (%p609_p11), %v4385_v16  ;;  %v4392_v26 = vld [vmem:[%s5553_s13 + $0x60] sm:$0xff] (%p609_p11)  }
 0x4bb   : > { %3977 = vmatprep.subr.bf16.mxu1 (%p609_p11), %v4490_v8 }
 0x4bc   : >> { %3786 = vmatmul.mubr.msk.bf16.vlgmr.msra.gmra.mrb[8].mxu0 %vm2396_vm11, %v2393_v28  ;;  %v4394_v28 = vld [vmem:[%s5553_s13 + $0x68] sm:$0xff] (%p609_p11)  }
 0x4bd   : >> { %2453 = vmatpush1.bf16.msra.mxu0 %v2402_v27  ;;  %2484 = vmatprep.mubr.bf16.mxu0 %v4489_v2  ;;  %v4393_v27 = vld [vmem:[%s5553_s13 + $0x88] sm:$0xff] (%p609_p11)  }
 0x4be   : >> { %2581 = vmatprep.subr.bf16.mxu0 %v4489_v2  ;;  %3978 = vmatpush3.bf16.msra.mxu1 (%p609_p11), %v4387_v18 }
 0x4bf   : > { %3997 = vmatprep.subr.bf16.mxu1 (%p609_p11), %v4490_v8 }
 0x4c4   : >> { %3788 = vmatmul.mubr.msk.bf16.vlgmr.msra.gmra.mrb[12].mxu0 %vm2396_vm11, %v2448_v29  ;;  %v4395_v29 = vld [vmem:[%s5553_s13 + $0x90] sm:$0xff] (%p609_p11)  }
 0x4c5   : >> { %2582 = vmatpush1.bf16.msra.mxu0 %v4358_v32  ;;  %v4396_v32 = vld [vmem:[%s5553_s13 + $0x70] sm:$0xff] (%p609_p11)  }
 0x4c6   : >> { %2583 = vmatprep.subr.bf16.mxu0 %v4489_v2 }
 0x4c9   : >> { %2584 = vmatpush1.bf16.msra.mxu0 %v4359_v31 }
 0x4ca   : >> { %2585 = vmatprep.subr.bf16.mxu0 %v4489_v2 }
 0x4cd   : >> { %2586 = vmatpush1.bf16.msra.mxu0 %v4360_v33  ;;  %v4397_v33 = vld [vmem:[%s5553_s13 + $0x98] sm:$0xff] (%p609_p11)  }
 0x4ce   : >> { %2587 = vmatprep.subr.bf16.mxu0 %v4489_v2 }
 0x4d1   : >> { %2588 = vmatpush1.bf16.msra.mxu0 %v4361_v14 }
 0x4d2   : >> { %2589 = vmatprep.subr.bf16.mxu0 %v4489_v2 }
 0x4d5   : >> { %2590 = vmatpush1.bf16.msra.mxu0 %v4362_v30 }
 0x4d6   : >> { %2591 = vmatprep.subr.bf16.mxu0 %v4489_v2 }
 0x4d9   : >> { %2592 = vmatpush1.bf16.msra.mxu0 %v4363_v34  ;;  %v4398_v34 = vld [vmem:[%s5553_s13 + $0xa0] sm:$0xff] (%p609_p11)  }
 0x4da   : >> { %2593 = vmatprep.subr.bf16.mxu0 %v4489_v2 }
 0x4dd   : >> { %2594 = vmatpush1.bf16.msra.mxu0 %v4364_v35 }
 0x4de   : >> { %2595 = vmatprep.subr.bf16.mxu0 %v4489_v2 }
 0x4e1   : >> { %2596 = vmatpush1.bf16.msra.mxu0 %v4365_v36  ;;  %v4399_v36 = vld [vmem:[%s5553_s13 + $0xa8] sm:$0xff] (%p609_p11)  }
 0x4e2   : >> { %2597 = vmatprep.subr.bf16.mxu0 %v4489_v2 }
 0x4e5   : >> { %2598 = vmatpush1.bf16.msra.mxu0 %v4366_v37  ;;  %v4400_v37 = vld [vmem:[%s5553_s13 + $0xb0] sm:$0xff] (%p609_p11)  }
 0x4e6   : >> { %2599 = vmatprep.subr.bf16.mxu0 %v4489_v2 }
 0x4e9   : >> { %2600 = vmatpush1.bf16.msra.mxu0 %v4367_v38  ;;  %v4401_v38 = vld [vmem:[%s5553_s13 + $0xb8] sm:$0xff] (%p609_p11)  }
 0x4ea   : >> { %2701 = vmatprep.subr.bf16.mxu0 %v4489_v2 }
 0x58f   : >> { %v2441_v39 = vpop.f32.mrb[8].mxu0 }
 0x590   : >> { %v2443_v40 = vpop.f32.mrb[9].mxu0 }
 0x591   : >> { %v2445_v41 = vpop.f32.mrb[10].mxu0 }
 0x592   : >> { %v2446_v42 = vpop.f32.mrb[11].mxu0 }
 0x593   : > { %v4403_v42 = vld [vmem:[%s5555_s15] sm:$0xff] (%p609_p11)  }
 0x597   : >> { %v2486_v43 = vpop.f32.mrb[12].mxu0 }
 0x598   : >> { %v2493_v44 = vmax.f32 %v2441_v39, %v2486_v43  ;;  %v2488_v45 = vpop.f32.mrb[13].mxu0  ;;  %v4402_v39 = vld [vmem:[%s5553_s13 + $0xc0] sm:$0xff] (%p609_p11)   ;;  %v4404_v43 = vld [vmem:[%s5555_s15 + $0x8] sm:$0xff] (%p609_p11)  }
 0x599   : >> { %v2494_v46 = vmax.f32 %v2443_v40, %v2488_v45  ;;  %v2490_v47 = vpop.f32.mrb[14].mxu0  ;;  %v4406_v45 = vld [vmem:[%s5555_s15 + $0x18] sm:$0xff] (%p609_p11)  }
 0x59a   : >> { %v2491_v48 = vpop.f32.mrb[15].mxu0  ;;  %v2515_v51 = vpack.c.bf16 %v2493_v44, %v2493_v44  ;;  %v4405_v44 = vld [vmem:[%s5555_s15 + $0x10] sm:$0xff] (%p609_p11)   ;;  %v4408_v47 = vld [vmem:[%s5555_s15 + $0x28] sm:$0xff] (%p609_p11)  }
 0x59b   : >> { %v2516_v49 = vpack.c.bf16 %v2494_v46, %v2494_v46  ;;  %v4407_v46 = vld [vmem:[%s5555_s15 + $0x20] sm:$0xff] (%p609_p11)   ;;  %v4409_v48 = vld [vmem:[%s5555_s15 + $0x30] sm:$0xff] (%p609_p11)  }
 0x59d   : >> { %3799 = vmatprep.mubr.msk.bf16.mxu0 %vm2577_vm12, %v2516_v49 }
 0x59e   : >> { %2614 = vmatmul.mubr.bf16.vlgmr.msra.gmra.mrb[16].mxu0 %v2515_v51 }
 0x59f   : >> { %2702 = vmatpush1.bf16.msra.mxu0 %v4368_v50  ;;  %3810 = vmatprep.mubr.msk.bf16.mxu0 %vm2577_vm12, %v2516_v49  ;;  %v4410_v49 = vld [vmem:[%s5555_s15 + $0x38] ss:$0 sps:$4 sm:$0xff] (%p609_p11)  }
 0x5a0   : >> { %2703 = vmatprep.subr.bf16.mxu0 %v4489_v2  ;;  %v3281_v50 = vsel (%p609_p11), %vm1577_vm6, %v4410_v49, 0 }
 0x5a3   : >> { %2704 = vmatpush1.bf16.msra.mxu0 %v4369_v52  ;;  %v4412_v52 = vld [vmem:[%s5557_s17 + $0x8] sm:$0xff] (%p609_p11)  }
 0x5a4   : >> { %2705 = vmatprep.subr.bf16.mxu0 %v4489_v2 }
 0x5a7   : >> { %2706 = vmatpush1.bf16.msra.mxu0 %v4370_v53  ;;  %v4413_v53 = vld [vmem:[%s5557_s17 + $0x10] sm:$0xff] (%p609_p11)  }
 0x5a8   : >> { %2707 = vmatprep.subr.bf16.mxu0 %v4489_v2 }
 0x5ab   : >> { %2708 = vmatpush1.bf16.msra.mxu0 %v4371_v54  ;;  %v4414_v54 = vld [vmem:[%s5557_s17 + $0x18] sm:$0xff] (%p609_p11)  }
 0x5ac   : >> { %2709 = vmatprep.subr.bf16.mxu0 %v4489_v2 }
 0x5af   : >> { %2710 = vmatpush1.bf16.msra.mxu0 %v4372_v55 }
 0x5b0   : >> { %2711 = vmatprep.subr.bf16.mxu0 %v4489_v2 }
 0x5b3   : >> { %2712 = vmatpush1.bf16.msra.mxu0 %v4373_v56 }
 0x5b4   : >> { %2713 = vmatprep.subr.bf16.mxu0 %v4489_v2 }
 0x5b7   : >> { %2714 = vmatpush1.bf16.msra.mxu0 %v4374_v57 }
 0x5b8   : >> { %2715 = vmatprep.subr.bf16.mxu0 %v4489_v2 }
 0x5bb   : >> { %2716 = vmatpush1.bf16.msra.mxu0 %v4375_v58 }
 0x5bc   : >> { %2717 = vmatprep.subr.bf16.mxu0 %v4489_v2 }
 0x5bf   : >> { %2718 = vmatpush1.bf16.msra.mxu0 %v4376_v59 }
 0x5c0   : >> { %2719 = vmatprep.subr.bf16.mxu0 %v4489_v2 }
 0x5c3   : >> { %2720 = vmatpush1.bf16.msra.mxu0 %v4377_v60 }
 0x5c4   : > { %3955 = vmatprep.subr.bf16.mxu0 (%p609_p11), %v4490_v8 }
 0x5c6   : >> { %2734 = vmatmul.mubr.bf16.vlgmr.msra.gmra.mrb[20].mxu0 %v2515_v51  ;;  %v4411_v51 = vld [vmem:[%s5557_s17] sm:$0xff] (%p609_p11)  }
 0x5c7   : > { %3956 = vmatpush3.bf16.msra.mxu0 (%p609_p11), %v4378_v7  ;;  %3965 = vmatprep.mubr.msk.bf16.mxu0 (%p609_p11), %vm4491_vm2, %v4490_v8 }
 0x5c8   : > { %3957 = vmatprep.subr.bf16.mxu0 (%p609_p11), %v4490_v8 }
 0x5cb   : > { %3958 = vmatpush3.bf16.msra.mxu0 (%p609_p11), %v4380_v10 }
 0x5cc   : > { %3959 = vmatprep.subr.bf16.mxu0 (%p609_p11), %v4490_v8 }
 0x5cf   : > { %3960 = vmatpush3.bf16.msra.mxu0 (%p609_p11), %v4382_v12 }
 0x5d0   : > { %3961 = vmatprep.subr.bf16.mxu0 (%p609_p11), %v4490_v8 }
 0x5d3   : > { %3962 = vmatpush3.bf16.msra.mxu0 (%p609_p11), %v4384_v15 }
 0x5d4   : > { %3963 = vmatprep.subr.bf16.mxu0 (%p609_p11), %v4490_v8 }
 0x5d7   : > { %3964 = vmatpush3.bf16.msra.mxu0 (%p609_p11), %v4386_v17 }
 0x5d8   : > { %3983 = vmatprep.subr.bf16.mxu0 (%p609_p11), %v4490_v8 }
 0x671   : >> { %v2615_v61 = vpop.f32.mrb[16].mxu0 }
 0x672   : >> { %v2617_v62 = vpop.f32.mrb[17].mxu0 }
 0x673   : >> { %v2618_v63 = vpop.f32.mrb[18].mxu0 }
 0x674   : >> { %v2619_v0 = vpop.f32.mrb[19].mxu0 }
 0x699   : >> { %v2735_v1 = vpop.f32.mrb[20].mxu0 }
 0x69a   : >> { %v2741_v3 = vmax.f32 %v2615_v61, %v2735_v1  ;;  %v2737_v5 = vpop.f32.mrb[21].mxu0  ;;  %611 = sbr.rel (!%p609_p11) target bundleno = 35 (0x23), region = 160 }
 0x69b   : >> { %v2738_v6 = vpop.f32.mrb[22].mxu0 }
 0x69c   : >> { %2744 = vst.msk [vmem:[%s2742_s21] sm:$0x1] %vm2743_vm13, %v2741_v3  ;;  %v2739_v2 = vpop.f32.mrb[23].mxu0 }
 0x69d   : >> { %3811 = vst.msk [vmem:[%s2742_s21 + $0x7] sm:$0x2] %vm2747_vm14, %v2741_v3 }
 0x69e   : >> { %3812 = vst.msk [vmem:[%s2742_s21 + $0xe] sm:$0x4] %vm2751_vm15, %v2741_v3 }
 0x69f   : >> { %3813 = vst.msk [vmem:[%s2742_s21 + $0x15] sm:$0x8] %vm2755_vm0, %v2741_v3 }
 0x6a0   : >> { %3814 = vst.msk [vmem:[%s2742_s21 + $0x1c] sm:$0x10] %vm2759_vm1, %v2741_v3  ;;  %s4417_s21 = scalar_lea.vmem (%p609_p11), %s5496_s25, 128 }
 0x6a1   : > { %p4418_p12 = scmp.ne.s32.totalorder %s5496_s25, %s4417_s21 }
 0x6a3   : > { %p4419_p13 = pnand %p4418_p12, %p4631_p5 }
 0x6a5   : > { %p4420_p0 = pneg %p4419_p13 }
 0x6a7   : > { %v2774_v19 = vld [vmem:[#allocation2 + $0x8] sm:$0xff]  ;;  %v2761_v20 = vld [vmem:[#allocation2] sm:$0xff]  ;;  %v2935_v31 = vld [vmem:[#allocation2 + $0x10] sm:$0xff] }
 0x6a8   : > { %v2786_v4 = vpack.c.bf16 %v2774_v19, %v2774_v19  ;;  %v2772_v21 = vpack.c.bf16 %v2761_v20, %v2761_v20  ;;  %v3023_v14 = vld [vmem:[#allocation2 + $0x18] sm:$0xff]  ;;  %v2947_v30 = vpack.c.bf16 %v2935_v31, %v2935_v31  ;;  %v3111_v40 = vld [vmem:[#allocation2 + $0x20] sm:$0xff] }
 0x6a9   : > { %v3035_v35 = vpack.c.bf16 %v3023_v14, %v3023_v14  ;;  %v3123_v41 = vpack.c.bf16 %v3111_v40, %v3111_v40  ;;  %v3896_v31 = vld [vmem:[%s5588_s18] ss:$0 sm:$0xff]  ;;  %s4492_s18 = smov [#allocation3]  }
 0x6aa   : > { %3966 = vmatmul.mubr.msk.bf16.vlgmr.msra.gmra.mrb[0].mxu0 %vm2817_vm3, %v2786_v4  ;;  %3980 = vmatmul.mubr.msk.bf16.vlgmr.msra.gmra.mrb[0].mxu1 %vm2817_vm3, %v2772_v21  ;;  %v4415_v21 = vld [vmem:[%s5557_s17 + $0x20] sm:$0xff]   ;;  %s4421_s28 = sshll.u32 %s4492_s18, 4  ;;  %s4422_s28 = int_to_ptr.vmem [resolvable:$false] %s4421_s28 }
 0x6ab   : > { %3984 = vmatpush3.bf16.msra.mxu0 %v4388_v22  ;;  %3998 = vmatpush3.bf16.msra.mxu1 %v4389_v23  ;;  %v4416_v22 = vld [vmem:[%s5557_s17 + $0x28] ss:$0 sps:$4 sm:$0x33]   ;;  %s4423_s27 = scalar_lea.vmem %s4422_s28, 256  ;;  %p4424_p1 = scmp.lt.s32.totalorder %s5496_s25, %s4422_s28 }
 0x6ac   : > { %3985 = vmatprep.subr.bf16.mxu0 %v4490_v8  ;;  %3999 = vmatprep.subr.bf16.mxu1 %v4490_v8  ;;  %v3382_v23 = vsel %vm1842_vm8, %v4416_v22, 0  ;;  %p4425_p2 = scmp.lt.s32.totalorder %s4423_s27, %s4417_s21 }
 0x6ad   : > { %3993 = vmatprep.mubr.msk.bf16.mxu0 %vm4491_vm2, %v4490_v8  ;;  %4007 = vmatprep.mubr.msk.bf16.mxu1 %vm4491_vm2, %v4490_v8 }
 0x6ae   : > { %p4426_p3 = por %p4425_p2, %p4424_p1 }
 0x6af   : > { %3986 = vmatpush3.bf16.msra.mxu0 %v4390_v24  ;;  %4000 = vmatpush3.bf16.msra.mxu1 %v4391_v25  ;;  %v3886_v24 = vld [vmem:[%s5556_s16] ss:$0 sm:$0xff] }
 0x6b0   : > { %3987 = vmatprep.subr.bf16.mxu0 %v4490_v8  ;;  %4001 = vmatprep.subr.bf16.mxu1 %v4490_v8  ;;  %p4427_p4 = pnand %p4426_p3, %p4420_p0 }
 0x6b3   : > { %3988 = vmatpush3.bf16.msra.mxu0 %v4392_v26  ;;  %4002 = vmatpush3.bf16.msra.mxu1 %v4393_v27 }
 0x6b4   : > { %3989 = vmatprep.subr.bf16.mxu0 %v4490_v8  ;;  %4003 = vmatprep.subr.bf16.mxu1 %v4490_v8 }
 0x6b7   : > { %3990 = vmatpush3.bf16.msra.mxu0 %v4394_v28  ;;  %4004 = vmatpush3.bf16.msra.mxu1 %v4395_v29 }
 0x6b8   : > { %3991 = vmatprep.subr.bf16.mxu0 %v4490_v8  ;;  %4005 = vmatprep.subr.bf16.mxu1 %v4490_v8 }
 0x6bb   : > { %3992 = vmatpush3.bf16.msra.mxu0 %v4396_v32  ;;  %4006 = vmatpush3.bf16.msra.mxu1 %v4397_v33 }
 0x6bc   : > { %4011 = vmatprep.subr.bf16.mxu0 %v4490_v8  ;;  %4025 = vmatprep.subr.bf16.mxu1 %v4490_v8 }
 0x6be   : > { %3994 = vmatmul.mubr.msk.bf16.vlgmr.msra.gmra.mrb[4].mxu0 %vm2817_vm3, %v2947_v30  ;;  %4008 = vmatmul.mubr.msk.bf16.vlgmr.msra.gmra.mrb[4].mxu1 %vm2817_vm3, %v3035_v35 }
 0x6bf   : > { %4012 = vmatpush3.bf16.msra.mxu0 %v4398_v34  ;;  %4021 = vmatprep.mubr.msk.bf16.mxu0 %vm4491_vm2, %v4490_v8 }
 0x6c0   : > { %4013 = vmatprep.subr.bf16.mxu0 %v4490_v8  ;;  %4041 = vmatprep.mubr.msk.bf16.mxu1 %vm4491_vm2, %v4490_v8 }
 0x6c1   : > { %4026 = vmatpush3.bf16.msra.mxu1 %v4403_v42 }
 0x6c2   : > { %4027 = vmatprep.subr.bf16.mxu1 %v4490_v8 }
 0x6c3   : > { %4014 = vmatpush3.bf16.msra.mxu0 %v4399_v36 }
 0x6c4   : > { %4015 = vmatprep.subr.bf16.mxu0 %v4490_v8 }
 0x6c5   : > { %4028 = vmatpush3.bf16.msra.mxu1 %v4404_v43 }
 0x6c6   : > { %4029 = vmatprep.subr.bf16.mxu1 %v4490_v8 }
 0x6c7   : > { %4016 = vmatpush3.bf16.msra.mxu0 %v4400_v37 }
 0x6c8   : > { %4017 = vmatprep.subr.bf16.mxu0 %v4490_v8 }
 0x6c9   : > { %4030 = vmatpush3.bf16.msra.mxu1 %v4405_v44 }
 0x6ca   : > { %4031 = vmatprep.subr.bf16.mxu1 %v4490_v8 }
 0x6cb   : > { %4018 = vmatpush3.bf16.msra.mxu0 %v4401_v38 }
 0x6cc   : > { %4019 = vmatprep.subr.bf16.mxu0 %v4490_v8 }
 0x6cd   : > { %4032 = vmatpush3.bf16.msra.mxu1 %v4406_v45 }
 0x6ce   : > { %4033 = vmatprep.subr.bf16.mxu1 %v4490_v8 }
 0x6cf   : > { %4020 = vmatpush3.bf16.msra.mxu0 %v4402_v39 }
 0x6d0   : > { %4045 = vmatprep.subr.bf16.mxu0 %v4490_v8 }
 0x6d1   : > { %4034 = vmatpush3.bf16.msra.mxu1 %v4407_v46 }
 0x6d2   : > { %4022 = vmatmul.mubr.msk.bf16.vlgmr.msra.gmra.mrb[8].mxu0 %vm2817_vm3, %v3123_v41  ;;  %4035 = vmatprep.subr.bf16.mxu1 %v4490_v8 }
 0x6d3   : > { %4057 = vmatprep.mubr.msk.bf16.mxu0 %vm4491_vm2, %v4490_v8  ;;  %4046 = vmatpush3.bf16.msra.mxu0 %v4411_v51 }
 0x6d4   : > { %4047 = vmatprep.subr.bf16.mxu0 %v4490_v8 }
 0x6d5   : > { %4036 = vmatpush3.bf16.msra.mxu1 %v4408_v47 }
 0x6d6   : > { %4037 = vmatprep.subr.bf16.mxu1 %v4490_v8 }
 0x6d7   : > { %4048 = vmatpush3.bf16.msra.mxu0 %v4412_v52 }
 0x6d8   : > { %4049 = vmatprep.subr.bf16.mxu0 %v4490_v8 }
 0x6d9   : > { %4038 = vmatpush3.bf16.msra.mxu1 %v4409_v48 }
 0x6da   : > { %4039 = vmatprep.subr.bf16.mxu1 %v4490_v8 }
 0x6db   : > { %4050 = vmatpush3.bf16.msra.mxu0 %v4413_v53 }
 0x6dc   : > { %4051 = vmatprep.subr.bf16.mxu0 %v4490_v8 }
 0x6dd   : > { %4040 = vmatpush3.bf16.msra.mxu1 %v3281_v50 }
 0x6df   : > { %4052 = vmatpush3.bf16.msra.mxu0 %v4414_v54 }
 0x6e0   : > { %4053 = vmatprep.subr.bf16.mxu0 %v4490_v8 }
 0x6e3   : > { %4054 = vmatpush3.bf16.msra.mxu0 %v4415_v21 }
 0x6e4   : > { %4055 = vmatprep.subr.bf16.mxu0 %v4490_v8 }
 0x6e7   : > { %4056 = vmatpush3.bf16.msra.mxu0 %v3382_v23 }
 0x77d   : > { %v2855_v55 = vpop.f32.mrb[0].mxu0  ;;  %v2928_v57 = vpop.f32.mrb[0].mxu1 }
 0x77e   : > { %v3967_v56 = vpop.f32.mrb[1].mxu0  ;;  %v2929_v58 = vadd.f32 %v2928_v57, %v2855_v55  ;;  %v3981_v60 = vpop.f32.mrb[1].mxu1 }
 0x77f   : > { %v2858_v59 = vpop.f32.mrb[2].mxu0  ;;  %v2931_v62 = vpop.f32.mrb[2].mxu1 }
 0x780   : > { %v3968_v61 = vpop.f32.mrb[3].mxu0  ;;  %v3982_v63 = vpop.f32.mrb[3].mxu1 }
 0x791   : > { %v3015_v0 = vpop.f32.mrb[4].mxu0  ;;  %v3103_v5 = vpop.f32.mrb[4].mxu1 }
 0x792   : > { %v3021_v1 = vadd.f32 %v3015_v0, %v2929_v58  ;;  %v3995_v3 = vpop.f32.mrb[5].mxu0  ;;  %v4009_v2 = vpop.f32.mrb[5].mxu1 }
 0x793   : > { %v3018_v6 = vpop.f32.mrb[6].mxu0  ;;  %v3106_v10 = vpop.f32.mrb[6].mxu1 }
 0x794   : > { %v3109_v7 = vadd.f32 %v3103_v5, %v3021_v1  ;;  %v3996_v9 = vpop.f32.mrb[7].mxu0  ;;  %v4010_v11 = vpop.f32.mrb[7].mxu1 }
 0x7a5   : > { %v3191_v12 = vpop.f32.mrb[8].mxu0 }
 0x7a6   : > { %v3197_v15 = vadd.f32 %v3191_v12, %v3109_v7  ;;  %v4023_v16 = vpop.f32.mrb[9].mxu0 }
 0x7a7   : > { %v3194_v17 = vpop.f32.mrb[10].mxu0 }
 0x7a8   : > { %v3205_v18 = vadd.f32 %v3885_v13, %v3197_v15  ;;  %v4024_v19 = vpop.f32.mrb[11].mxu0 }
 0x7aa   : > { %v3206_v20 = vmax.f32 %v3205_v18, 0.0 }
 0x7ac   : > { %v3222_v4 = vpack.c.bf16 %v3206_v20, %v3206_v20 }
 0x7ae   : > { %4042 = vmatmul.mubr.msk.bf16.vlgmr.msra.gmra.mrb[8].mxu1 %vm3275_vm4, %v3222_v4 }
 0x881   : > { %v3317_v25 = vpop.f32.mrb[8].mxu1 }
 0x882   : > { %v3318_v26 = vadd.f32 %v3886_v24, %v3317_v25  ;;  %v4043_v27 = vpop.f32.mrb[9].mxu1 }
 0x883   : > { %v3320_v28 = vpop.f32.mrb[10].mxu1 }
 0x884   : > { %v3323_v29 = vmax.f32 %v3318_v26, 0.0  ;;  %v4044_v32 = vpop.f32.mrb[11].mxu1 }
 0x886   : > { %v3335_v8 = vpack.c.bf16 %v3323_v29, %v3323_v29 }
 0x888   : > { %4058 = vmatmul.mubr.msk.bf16.vlgmr.msra.gmra.mrb[12].mxu0 %vm1838_vm9, %v3335_v8 }
 0x95b   : > { %v3418_v33 = vpop.f32.mrb[12].mxu0 }
 0x95c   : > { %v3419_v14 = vadd.f32 %v3896_v31, %v3418_v33  ;;  %v4059_v30 = vpop.f32.mrb[13].mxu0 }
 0x95d   : > { %v3421_v34 = vpop.f32.mrb[14].mxu0 }
 0x95e   : > { %3424 = vst [vmem:[%s5592_s2] sm:$0xff] %v3419_v14  ;;  %v4060_v35 = vpop.f32.mrb[15].mxu0 }
 0x95f   : > { %4430 = shalt.err (!%p4427_p4)
}
 0x960   : > { %s4431_s29 = scalar_lea.hbm %s5494_s24, 128  ;;  %s4435_s20 = scalar_lea.hbm %s5591_s26, 256 }
 0x961   : > { %p4432_p7 = scmp.ne.s32.totalorder %s5494_s24, %s4431_s29  ;;  %p4436_p10 = scmp.lt.u32.totalorder %s5494_s24, %s5591_s26 }
 0x962   : > { %p4437_p11 = scmp.lt.u32.totalorder %s4435_s20, %s4431_s29  ;;  %p4439_p13 = scmp.lt.u32.totalorder %s4431_s29, %s5494_s24 }
 0x963   : > { %p4433_p8 = pnand %p4432_p7, %p4631_p5 }
 0x964   : > { %p4438_p12 = por %p4437_p11, %p4436_p10 }
 0x965   : > { %p4434_p9 = pneg %p4433_p8 }
 0x966   : > { %p4440_p0 = por %p4439_p13, %p4438_p12 }
 0x968   : > { %p4441_p1 = pnand %p4440_p0, %p4434_p9 }
 0x96a   : > { %4444 = shalt.err (!%p4441_p1)
}
 0x96b   : > { %4109 = dma.vmem_to_hbm [thread:$0]  (%p4631_p5), %s5496_s25, 128, %s5494_s24, %s3426_s0  }
 0x96c PF: > { %s5594_s21 = sld [smem:[#allocation8_spill]]  ;;  %s5595_s18 = sld [smem:[#allocation6_spill]] }
 0x972   : > { %p4115_p2 = scmp.ge.s32.totalorder %s5594_s21, 2  ;;  %s3451_s27 = sand.u32 1, %s5595_s18  }
 0x973   : > { %s3452_s22 = scalar_lea.sflag [#allocation4], %s3451_s27 }
 0x974   : > { %p4112_p3 = pnand %p4115_p2, %p4635_p6 }
 0x976   : > { %4466 = dma.done.wait (!%p4112_p3), %s3452_s22, 128  }
 0x977   : > { %4468 = vsyncadd (!%p4112_p3), %s3452_s22, 4294967168  ;;  %s5597_s21 = sld [smem:[#allocation9_spill]]  ;;  %s5598_s29 = sld [smem:[#allocation7_spill]] }
 0x978   : > { %s5599_s20 = sld [smem:[#allocation10_spill]]  ;;  %s5600_s0 = smov %s4475_s30 }
 0x97d   : > { %p29_p4 = scmp.ge.s32.totalorder %s5597_s21, 4   ;;  %s5601_s30 = smov %s5598_s29 }
 0x97f   :  { %31 = sbr.rel (!%p29_p4) target bundleno = 10 (0xa), region = 171 }
 0x986   :  { %3457 = vsyncpa [#allocation4], 1 }
 0x987   :  { %3459 = vsyncpa [#allocation4 + $0x1], 1 }

</bundles_post_ra>
